<compile_context>
chip_gen: v7x
topology: tpu7x:2x2x1
jax: 0.10.0
libtpu: 0.0.40
codegen_flags: <defaults>
</compile_context>

<pallas_src>
import functools
import math

import jax
import jax.numpy as jnp
from jax.experimental import pallas as pl
from jax.experimental.pallas import tpu as pltpu


# --------------------------- static architecture ---------------------------- #

K1, K2, K3 = 16, 15, 3                  # conv kernel sizes
C1, C2, C3 = 32, 32, 64                 # conv output channels
P2, P3 = (K2 - 1) // 2, (K3 - 1) // 2   # circular pads for conv2 / conv3
HID = 128
LANE = 128


def _round_up(v, m):
    return (v + m - 1) // m * m


def layer_lengths(seq_len):
    """Length bookkeeping shared by init, prep and forward."""
    l1c = seq_len + 2 - K1 + 1          # conv1: zero pad 1, kernel 16
    l1 = l1c // 2                       # MaxPool1d(2) (floor)
    l2c = l1                            # conv2: circular pad 7, kernel 15 -> same len
    l2 = l2c // 2
    l3c = l2                            # conv3: circular pad 1, kernel 3 -> same len
    l3 = l3c // 2
    return l1c, l1, l2c, l2, l3c, l3


# ------------------------------ fused kernel -------------------------------- #

def _wkn_kernel(x_ref, w1_ref, w2_ref, b2_ref, w3_ref, b3_ref,
                wf_ref, bf_ref, wc_ref, bc_ref, out_ref, *, h1, h2, h3):
    """Whole MyWKN forward for one batch tile: 5 matmuls + VPU relu/max."""
    f32 = jnp.float32

    def conv_relu_pool(act, w_ref, b_ref, half):
        # W_band columns = [even pooled positions | odd pooled positions]
        y = jnp.dot(act.astype(w_ref.dtype), w_ref[...],
                    preferred_element_type=f32)
        if b_ref is not None:
            y = y + b_ref[...]
        y = jnp.maximum(y, 0.0)                          # ReLU
        return jnp.maximum(y[:, :half], y[:, half:])     # MaxPool1d(2), 128-aligned

    x = x_ref[...]                                                   # (TB, L)
    m1 = conv_relu_pool(x, w1_ref, None, h1)     # Laplace conv (no bias)  (TB, H1)
    m2 = conv_relu_pool(m1, w2_ref, b2_ref, h2)  # conv2                   (TB, H2)
    m3 = conv_relu_pool(m2, w3_ref, b3_ref, h3)  # conv3                   (TB, H3)

    # Flatten is folded into wf_ref at prep time; Linear(128) + ReLU
    hf = jnp.maximum(
        jnp.dot(m3.astype(wf_ref.dtype), wf_ref[...],
                preferred_element_type=f32) + bf_ref[...], 0.0)       # (TB, 128)
    # classifier (padded to 128 lane-dense columns)
    out_ref[...] = (jnp.dot(hf.astype(wc_ref.dtype), wc_ref[...],
                            preferred_element_type=f32)
                    + bc_ref[...]).astype(out_ref.dtype)


# ------------------------------ forward wrapper ------------------------------ #

def mywkn_forward(x_ncl, kparams, num_classes):
    """Forward pass of MyWKN.  x_ncl: (N, 1, L), same layout the torch module takes."""
    n, cin, seq_len = x_ncl.shape
    assert cin == 1, "Laplace_fast only supports a single input channel"
    l1c, l1, l2c, l2, l3c, l3 = layer_lengths(seq_len)
    # circular padding (torch) requires pad <= length; pooling needs non-empty output
    assert l1 >= P2 and l2 >= P3 and l3 >= 1, "seq_len too short for this architecture"

    h1 = kparams["w2b"].shape[0]
    h2 = kparams["w3b"].shape[0]
    h3 = kparams["wfb"].shape[0]
    ncp = kparams["wcb"].shape[1]
    assert kparams["w1b"].shape == (seq_len, 2 * h1), "params prepared for another L"

    # batch tile: multiple of 8 sublanes; grid splits batch across tiles (and across
    # v7x's two TensorCores via the "parallel" semantics)
    tb = min(128, _round_up(n, 8))
    n_pad = _round_up(n, tb)
    x2d = jnp.pad(x_ncl.reshape(n, seq_len).astype(jnp.float32),
                  ((0, n_pad - n), (0, 0)))

    kernel = functools.partial(_wkn_kernel, h1=h1, h2=h2, h3=h3)

    def resident(arr):          # weights: same block every grid step -> VMEM resident
        return pl.BlockSpec(arr.shape, lambda i: (0, 0))

    in_specs = [
        pl.BlockSpec((tb, seq_len), lambda i: (i, 0)),
        resident(kparams["w1b"]),
        resident(kparams["w2b"]), resident(kparams["b2b"]),
        resident(kparams["w3b"]), resident(kparams["b3b"]),
        resident(kparams["wfb"]), resident(kparams["bfb"]),
        resident(kparams["wcb"]), resident(kparams["bcb"]),
    ]

    out = pl.pallas_call(
        kernel,
        grid=(n_pad // tb,),
        in_specs=in_specs,
        out_specs=pl.BlockSpec((tb, ncp), lambda i: (i, 0)),
        out_shape=jax.ShapeDtypeStruct((n_pad, ncp), jnp.float32),
        compiler_params=pltpu.CompilerParams(
            dimension_semantics=("parallel",)),
    )(x2d, kparams["w1b"], kparams["w2b"], kparams["b2b"], kparams["w3b"],
      kparams["b3b"], kparams["wfb"], kparams["bfb"], kparams["wcb"],
      kparams["bcb"])
    return out[:n, :num_classes]


# ------------------------- parameters (torch layout) ------------------------- #

def laplace_filters(out_channels=C1, kernel_size=K1):
    """Deterministic Laplace_fast filter bank (matches the torch parameter init)."""
    a_ = jnp.linspace(1.0, 10.0, out_channels).reshape(-1, 1)
    b_ = jnp.linspace(0.0, 10.0, out_channels).reshape(-1, 1)
    time_disc = jnp.linspace(0.0, 1.0, kernel_size)
    p = (time_disc - b_) / (a_ + 1e-8)
    A, ep, tal, f = 0.08, 0.03, 0.1, 50.0
    w = 2.0 * math.pi * f
    q = 1.0 - ep ** 2
    filt = A * jnp.exp(-ep / math.sqrt(q) * (w * (p - tal))) * -jnp.sin(w * (p - tal))
    return filt.astype(jnp.float32)          # (C1, K1)


def init_params(key, seq_len, num_classes):
    """Raw parameters in the layouts the torch module would hold them in."""
    k2w, k2b, k3w, k3b, kfw, kfb, kcw, kcb = jax.random.split(key, 8)

    def uni(k, shape, fan_in):
        bound = 1.0 / math.sqrt(fan_in)
        return jax.random.uniform(k, shape, jnp.float32, -bound, bound)

    _, _, _, _, _, l3 = layer_lengths(seq_len)
    flat = C3 * l3
    return {
        "w1": laplace_filters(C1, K1),                 # Laplace conv, no bias
        "w2": uni(k2w, (C2, C1, K2), C1 * K2),         # LazyConv1d(32, k=15)
        "b2": uni(k2b, (C2,), C1 * K2),
        "w3": uni(k3w, (C3, C2, K3), C2 * K3),         # LazyConv1d(64, k=3)
        "b3": uni(k3b, (C3,), C2 * K3),
        "wf": uni(kfw, (HID, flat), flat),             # LazyLinear(128)
        "bf": uni(kfb, (HID,), flat),
        "wc": uni(kcw, (num_classes, HID), HID),       # classifier LazyLinear
        "bc": uni(kcb, (num_classes,), HID),
    }


# ------------------ one-time prep: banded conv+pool weights ------------------ #

def _band_matrix(w_oik, in_len, pad, circular, out_pos, n_rows, n_cols, dtype):
    """Dense band B with B[p*C_in + c, j*C_out + o] = w[o, c, k] whenever the input
    position p is the k-th tap of output position out_pos[j] (zero/circular pad)."""
    c_out, c_in, k = w_oik.shape
    out_pos = jnp.asarray(out_pos, jnp.int32)
    src = out_pos[:, None] + jnp.arange(k)[None, :] - pad          # (n_out, K)
    if circular:
        src = jnp.mod(src, in_len)
        sel = (jnp.arange(in_len)[:, None, None] == src[None, :, :])
    else:
        valid = (src >= 0) & (src < in_len)
        srcc = jnp.clip(src, 0, in_len - 1)
        sel = (jnp.arange(in_len)[:, None, None] == srcc[None, :, :]) & valid[None]
    sel = sel.astype(jnp.float32)                                  # (in_len, n_out, K)
    w_kio = jnp.transpose(w_oik, (2, 1, 0)).astype(jnp.float32)    # (K, C_in, C_out)
    band = jnp.einsum("pjk,kco->pcjo", sel, w_kio)
    band = band.reshape(in_len * c_in, out_pos.shape[0] * c_out)
    band = jnp.pad(band, ((0, n_rows - band.shape[0]),
                          (0, n_cols - band.shape[1])))
    return band.astype(dtype)


def _conv_pool_band(w_oik, in_len, pad, circular, n_pool, n_rows, half_cols, dtype):
    """[even-position band | odd-position band], each half padded to half_cols lanes."""
    even = _band_matrix(w_oik, in_len, pad, circular,
                        2 * jnp.arange(n_pool), n_rows, half_cols, dtype)
    odd = _band_matrix(w_oik, in_len, pad, circular,
                       2 * jnp.arange(n_pool) + 1, n_rows, half_cols, dtype)
    return jnp.concatenate([even, odd], axis=1)


def _bias_band(b, n_pool, half_cols):
    v = jnp.tile(b.astype(jnp.float32), n_pool)        # index j*C + o -> b[o]
    v = jnp.pad(v, (0, half_cols - v.shape[0]))
    return jnp.concatenate([v, v]).reshape(1, 2 * half_cols)


def prepare_params(params, seq_len, num_classes, mxu_dtype=jnp.bfloat16):
    """One-time layout prep: padding, pooled-position selection, Flatten permutation
    and all transposes are folded into the weights so the kernel is pure matmuls."""
    l1c, l1, l2c, l2, l3c, l3 = layer_lengths(seq_len)
    h1 = _round_up(l1 * C1, LANE)
    h2 = _round_up(l2 * C2, LANE)
    h3 = _round_up(l3 * C3, LANE)
    ncp = _round_up(num_classes, LANE)

    w1_oik = params["w1"].reshape(C1, 1, K1)
    w1b = _conv_pool_band(w1_oik, seq_len, 1, False, l1, seq_len, h1, mxu_dtype)
    w2b = _conv_pool_band(params["w2"], l1, P2, True, l2, h1, h2, mxu_dtype)
    w3b = _conv_pool_band(params["w3"], l2, P3, True, l3, h2, h3, mxu_dtype)

    # torch Flatten is channel-major (c*l3 + l); the in-kernel activation is
    # position-major (l*C3 + c) -> fold the permutation into the FC weight.
    wfb = jnp.transpose(params["wf"].reshape(HID, C3, l3), (2, 1, 0)).reshape(l3 * C3, HID)
    wfb = jnp.pad(wfb, ((0, h3 - wfb.shape[0]), (0, 0))).astype(mxu_dtype)

    # classifier padded to 128 lanes so the final store is unmasked.
    wcb = jnp.pad(jnp.transpose(params["wc"]),
                  ((0, 0), (0, ncp - num_classes))).astype(mxu_dtype)
    bcb = jnp.pad(params["bc"], (0, ncp - num_classes)).reshape(1, ncp)

    return {
        "w1b": w1b,
        "w2b": w2b, "b2b": _bias_band(params["b2"], l2, h2),
        "w3b": w3b, "b3b": _bias_band(params["b3"], l3, h3),
        "wfb": wfb, "bfb": params["bf"].reshape(1, HID).astype(jnp.float32),
        "wcb": wcb, "bcb": bcb.astype(jnp.float32),
    }


# --------------------------- plain-JAX reference ----------------------------- #

def mywkn_reference(x_ncl, params):
    """Straightforward jnp re-implementation of the torch forward (for checking)."""
    n = x_ncl.shape[0]
    x = jnp.transpose(x_ncl, (0, 2, 1)).astype(jnp.float32)          # (N, L, 1)

    def conv_nlc(h, w_oik, bias, pad, circular):
        cout, cin, k = w_oik.shape
        if circular:
            hp = jnp.concatenate([h[:, -pad:, :], h, h[:, :pad, :]], axis=1)
        else:
            hp = jnp.pad(h, ((0, 0), (pad, pad), (0, 0)))
        lout = hp.shape[1] - k + 1
        patches = jnp.stack([hp[:, i:i + lout, :] for i in range(k)], axis=3)
        wm = jnp.transpose(w_oik, (1, 2, 0))                          # (Cin,K,Cout)
        y = jnp.einsum("nlck,cko->nlo", patches, wm)
        return y if bias is None else y + bias

    def pool2(h):
        half = h.shape[1] // 2
        return jnp.maximum(h[:, 0:2 * half:2, :], h[:, 1:2 * half:2, :])

    w1 = params["w1"][:, None, :]                                    # (32, 1, 16)
    h = pool2(jax.nn.relu(conv_nlc(x, w1, None, 1, False)))
    h = pool2(jax.nn.relu(conv_nlc(h, params["w2"], params["b2"], P2, True)))
    h = pool2(jax.nn.relu(conv_nlc(h, params["w3"], params["b3"], P3, True)))
    flat = jnp.transpose(h, (0, 2, 1)).reshape(n, -1)                # torch Flatten order
    hf = jax.nn.relu(flat @ params["wf"].T + params["bf"])
    return hf @ params["wc"].T + params["bc"]


# ----------------------------------- main ------------------------------------ #

if __name__ == "__main__":
    num_classes = 10
    n, seq_len = 2, 64
    key = jax.random.PRNGKey(0)
    kx, kp = jax.random.split(key)
    x = jax.random.normal(kx, (n, 1, seq_len), dtype=jnp.float32)    # torch NCL input

    params = init_params(kp, seq_len, num_classes)
    kparams = prepare_params(params, seq_len, num_classes)           # one-time prep

    fwd = jax.jit(lambda xx, kp_: mywkn_forward(xx, kp_, num_classes))
    logits = jax.block_until_ready(fwd(x, kparams))

    assert logits.shape == (n, num_classes)
    assert bool(jnp.all(jnp.isfinite(logits)))

    # cross-check against a plain-JAX reference of the same module.  Tolerance is
    # relative and loose because MXU operands are bf16 (per the perf review);
    # indexing/layout bugs would show up as O(1) relative errors.
    ref = mywkn_reference(x, params)
    max_ref = float(jnp.max(jnp.abs(ref)))
    max_diff = float(jnp.max(jnp.abs(logits - ref)))
    assert max_diff <= 1e-1 * (1.0 + max_ref), (max_diff, max_ref)

    print("KERNEL_OK")
</pallas_src>

<mosaic_0001>
module attributes {stable_mosaic.version = 11 : i64} {
  func.func @_wkn_kernel(%arg0: i32, %arg1: memref<8x64xf32, #tpu.memory_space<vmem>>, %arg2: memref<64x1792xbf16, #tpu.memory_space<vmem>>, %arg3: memref<896x768xbf16, #tpu.memory_space<vmem>>, %arg4: memref<1x768xf32, #tpu.memory_space<vmem>>, %arg5: memref<384x768xbf16, #tpu.memory_space<vmem>>, %arg6: memref<1x768xf32, #tpu.memory_space<vmem>>, %arg7: memref<384x128xbf16, #tpu.memory_space<vmem>>, %arg8: memref<1x128xf32, #tpu.memory_space<vmem>>, %arg9: memref<128x128xbf16, #tpu.memory_space<vmem>>, %arg10: memref<1x128xf32, #tpu.memory_space<vmem>>, %arg11: memref<8x128xf32, #tpu.memory_space<vmem>>) attributes {dimension_semantics = [#tpu.dimension_semantics<parallel>], iteration_bounds = array<i64: 1>, scalar_prefetch = 0 : i64, scratch_operands = 0 : i64, tpu.core_type = #tpu.core_type<tc>, window_params = [{transform_indices = @transform_0, window_bounds = array<i64: 8, 64>}, {pipeline_mode = #tpu.pipeline_mode<synchronous>, transform_indices = @transform_1, window_bounds = array<i64: 64, 1792>}, {pipeline_mode = #tpu.pipeline_mode<synchronous>, transform_indices = @transform_2, window_bounds = array<i64: 896, 768>}, {pipeline_mode = #tpu.pipeline_mode<synchronous>, transform_indices = @transform_3, window_bounds = array<i64: 1, 768>}, {pipeline_mode = #tpu.pipeline_mode<synchronous>, transform_indices = @transform_4, window_bounds = array<i64: 384, 768>}, {pipeline_mode = #tpu.pipeline_mode<synchronous>, transform_indices = @transform_5, window_bounds = array<i64: 1, 768>}, {pipeline_mode = #tpu.pipeline_mode<synchronous>, transform_indices = @transform_6, window_bounds = array<i64: 384, 128>}, {pipeline_mode = #tpu.pipeline_mode<synchronous>, transform_indices = @transform_7, window_bounds = array<i64: 1, 128>}, {pipeline_mode = #tpu.pipeline_mode<synchronous>, transform_indices = @transform_8, window_bounds = array<i64: 128, 128>}, {pipeline_mode = #tpu.pipeline_mode<synchronous>, transform_indices = @transform_9, window_bounds = array<i64: 1, 128>}, {transform_indices = @transform_10, window_bounds = array<i64: 8, 128>}]} {
    %c0 = arith.constant 0 : index
    %c0_0 = arith.constant 0 : index
    %0 = vector.load %arg1[%c0, %c0_0] : memref<8x64xf32, #tpu.memory_space<vmem>>, vector<8x64xf32>
    %1 = arith.truncf %0 : vector<8x64xf32> to vector<8x64xbf16>
    %c0_1 = arith.constant 0 : index
    %c0_2 = arith.constant 0 : index
    %2 = vector.load %arg2[%c0_1, %c0_2] : memref<64x1792xbf16, #tpu.memory_space<vmem>>, vector<64x1792xbf16>
    %cst = arith.constant dense<0.000000e+00> : vector<8x1792xf32>
    %3 = tpu.matmul %1, %2, %cst {dimension_numbers = #tpu.dot_dimension_numbers<[1], [0], [0], [1], [0, 0, 1, 1], [], []>} : vector<8x64xbf16>, vector<64x1792xbf16>, vector<8x1792xf32> -> vector<8x1792xf32>
    %cst_3 = arith.constant 0.000000e+00 : f32
    %4 = vector.broadcast %cst_3 : f32 to vector<8x1792xf32>
    %5 = arith.maximumf %3, %4 : vector<8x1792xf32>
    %6 = vector.extract_strided_slice %5 {offsets = [0, 0], sizes = [8, 896], strides = [1, 1]} : vector<8x1792xf32> to vector<8x896xf32>
    %7 = vector.extract_strided_slice %5 {offsets = [0, 896], sizes = [8, 896], strides = [1, 1]} : vector<8x1792xf32> to vector<8x896xf32>
    %8 = arith.maximumf %6, %7 : vector<8x896xf32>
    %9 = arith.truncf %8 : vector<8x896xf32> to vector<8x896xbf16>
    %c0_4 = arith.constant 0 : index
    %c0_5 = arith.constant 0 : index
    %10 = vector.load %arg3[%c0_4, %c0_5] : memref<896x768xbf16, #tpu.memory_space<vmem>>, vector<896x768xbf16>
    %cst_6 = arith.constant dense<0.000000e+00> : vector<8x768xf32>
    %11 = tpu.matmul %9, %10, %cst_6 {dimension_numbers = #tpu.dot_dimension_numbers<[1], [0], [0], [1], [0, 0, 1, 1], [], []>} : vector<8x896xbf16>, vector<896x768xbf16>, vector<8x768xf32> -> vector<8x768xf32>
    %c0_7 = arith.constant 0 : index
    %c0_8 = arith.constant 0 : index
    %12 = vector.load %arg4[%c0_7, %c0_8] : memref<1x768xf32, #tpu.memory_space<vmem>>, vector<1x768xf32>
    %13 = vector.broadcast %12 : vector<1x768xf32> to vector<8x768xf32>
    %14 = arith.addf %11, %13 : vector<8x768xf32>
    %cst_9 = arith.constant 0.000000e+00 : f32
    %15 = vector.broadcast %cst_9 : f32 to vector<8x768xf32>
    %16 = arith.maximumf %14, %15 : vector<8x768xf32>
    %17 = vector.extract_strided_slice %16 {offsets = [0, 0], sizes = [8, 384], strides = [1, 1]} : vector<8x768xf32> to vector<8x384xf32>
    %18 = vector.extract_strided_slice %16 {offsets = [0, 384], sizes = [8, 384], strides = [1, 1]} : vector<8x768xf32> to vector<8x384xf32>
    %19 = arith.maximumf %17, %18 : vector<8x384xf32>
    %20 = arith.truncf %19 : vector<8x384xf32> to vector<8x384xbf16>
    %c0_10 = arith.constant 0 : index
    %c0_11 = arith.constant 0 : index
    %21 = vector.load %arg5[%c0_10, %c0_11] : memref<384x768xbf16, #tpu.memory_space<vmem>>, vector<384x768xbf16>
    %cst_12 = arith.constant dense<0.000000e+00> : vector<8x768xf32>
    %22 = tpu.matmul %20, %21, %cst_12 {dimension_numbers = #tpu.dot_dimension_numbers<[1], [0], [0], [1], [0, 0, 1, 1], [], []>} : vector<8x384xbf16>, vector<384x768xbf16>, vector<8x768xf32> -> vector<8x768xf32>
    %c0_13 = arith.constant 0 : index
    %c0_14 = arith.constant 0 : index
    %23 = vector.load %arg6[%c0_13, %c0_14] : memref<1x768xf32, #tpu.memory_space<vmem>>, vector<1x768xf32>
    %24 = vector.broadcast %23 : vector<1x768xf32> to vector<8x768xf32>
    %25 = arith.addf %22, %24 : vector<8x768xf32>
    %cst_15 = arith.constant 0.000000e+00 : f32
    %26 = vector.broadcast %cst_15 : f32 to vector<8x768xf32>
    %27 = arith.maximumf %25, %26 : vector<8x768xf32>
    %28 = vector.extract_strided_slice %27 {offsets = [0, 0], sizes = [8, 384], strides = [1, 1]} : vector<8x768xf32> to vector<8x384xf32>
    %29 = vector.extract_strided_slice %27 {offsets = [0, 384], sizes = [8, 384], strides = [1, 1]} : vector<8x768xf32> to vector<8x384xf32>
    %30 = arith.maximumf %28, %29 : vector<8x384xf32>
    %31 = arith.truncf %30 : vector<8x384xf32> to vector<8x384xbf16>
    %c0_16 = arith.constant 0 : index
    %c0_17 = arith.constant 0 : index
    %32 = vector.load %arg7[%c0_16, %c0_17] : memref<384x128xbf16, #tpu.memory_space<vmem>>, vector<384x128xbf16>
    %cst_18 = arith.constant dense<0.000000e+00> : vector<8x128xf32>
    %33 = tpu.matmul %31, %32, %cst_18 {dimension_numbers = #tpu.dot_dimension_numbers<[1], [0], [0], [1], [0, 0, 1, 1], [], []>} : vector<8x384xbf16>, vector<384x128xbf16>, vector<8x128xf32> -> vector<8x128xf32>
    %c0_19 = arith.constant 0 : index
    %c0_20 = arith.constant 0 : index
    %34 = vector.load %arg8[%c0_19, %c0_20] : memref<1x128xf32, #tpu.memory_space<vmem>>, vector<1x128xf32>
    %35 = vector.broadcast %34 : vector<1x128xf32> to vector<8x128xf32>
    %36 = arith.addf %33, %35 : vector<8x128xf32>
    %cst_21 = arith.constant 0.000000e+00 : f32
    %37 = vector.broadcast %cst_21 : f32 to vector<8x128xf32>
    %38 = arith.maximumf %36, %37 : vector<8x128xf32>
    %39 = arith.truncf %38 : vector<8x128xf32> to vector<8x128xbf16>
    %c0_22 = arith.constant 0 : index
    %c0_23 = arith.constant 0 : index
    %40 = vector.load %arg9[%c0_22, %c0_23] : memref<128x128xbf16, #tpu.memory_space<vmem>>, vector<128x128xbf16>
    %cst_24 = arith.constant dense<0.000000e+00> : vector<8x128xf32>
    %41 = tpu.matmul %39, %40, %cst_24 {dimension_numbers = #tpu.dot_dimension_numbers<[1], [0], [0], [1], [0, 0, 1, 1], [], []>} : vector<8x128xbf16>, vector<128x128xbf16>, vector<8x128xf32> -> vector<8x128xf32>
    %c0_25 = arith.constant 0 : index
    %c0_26 = arith.constant 0 : index
    %42 = vector.load %arg10[%c0_25, %c0_26] : memref<1x128xf32, #tpu.memory_space<vmem>>, vector<1x128xf32>
    %43 = vector.broadcast %42 : vector<1x128xf32> to vector<8x128xf32>
    %44 = arith.addf %41, %43 : vector<8x128xf32>
    %c0_27 = arith.constant 0 : index
    %c0_28 = arith.constant 0 : index
    %45 = vector.load %arg11[%c0_27, %c0_28] : memref<8x128xf32, #tpu.memory_space<vmem>>, vector<8x128xf32>
    tpu.vector_store %arg11[%c0_27, %c0_28], %44 {strides = array<i32>} : memref<8x128xf32, #tpu.memory_space<vmem>>, vector<8x128xf32>,
    return
  }
  func.func @transform_0(%arg0: i32) -> (i32, i32) {
    %c0_i32 = arith.constant 0 : i32
    %c0_i32_0 = arith.constant 0 : i32
    return %arg0, %c0_i32 : i32, i32
  }
  func.func @transform_1(%arg0: i32) -> (i32, i32) {
    %c0_i32 = arith.constant 0 : i32
    %c0_i32_0 = arith.constant 0 : i32
    %c0_i32_1 = arith.constant 0 : i32
    return %c0_i32, %c0_i32_0 : i32, i32
  }
  func.func @transform_2(%arg0: i32) -> (i32, i32) {
    %c0_i32 = arith.constant 0 : i32
    %c0_i32_0 = arith.constant 0 : i32
    %c0_i32_1 = arith.constant 0 : i32
    return %c0_i32, %c0_i32_0 : i32, i32
  }
  func.func @transform_3(%arg0: i32) -> (i32, i32) {
    %c0_i32 = arith.constant 0 : i32
    %c0_i32_0 = arith.constant 0 : i32
    %c0_i32_1 = arith.constant 0 : i32
    return %c0_i32, %c0_i32_0 : i32, i32
  }
  func.func @transform_4(%arg0: i32) -> (i32, i32) {
    %c0_i32 = arith.constant 0 : i32
    %c0_i32_0 = arith.constant 0 : i32
    %c0_i32_1 = arith.constant 0 : i32
    return %c0_i32, %c0_i32_0 : i32, i32
  }
  func.func @transform_5(%arg0: i32) -> (i32, i32) {
    %c0_i32 = arith.constant 0 : i32
    %c0_i32_0 = arith.constant 0 : i32
    %c0_i32_1 = arith.constant 0 : i32
    return %c0_i32, %c0_i32_0 : i32, i32
  }
  func.func @transform_6(%arg0: i32) -> (i32, i32) {
    %c0_i32 = arith.constant 0 : i32
    %c0_i32_0 = arith.constant 0 : i32
    %c0_i32_1 = arith.constant 0 : i32
    return %c0_i32, %c0_i32_0 : i32, i32
  }
  func.func @transform_7(%arg0: i32) -> (i32, i32) {
    %c0_i32 = arith.constant 0 : i32
    %c0_i32_0 = arith.constant 0 : i32
    %c0_i32_1 = arith.constant 0 : i32
    return %c0_i32, %c0_i32_0 : i32, i32
  }
  func.func @transform_8(%arg0: i32) -> (i32, i32) {
    %c0_i32 = arith.constant 0 : i32
    %c0_i32_0 = arith.constant 0 : i32
    %c0_i32_1 = arith.constant 0 : i32
    return %c0_i32, %c0_i32_0 : i32, i32
  }
  func.func @transform_9(%arg0: i32) -> (i32, i32) {
    %c0_i32 = arith.constant 0 : i32
    %c0_i32_0 = arith.constant 0 : i32
    %c0_i32_1 = arith.constant 0 : i32
    return %c0_i32, %c0_i32_0 : i32, i32
  }
  func.func @transform_10(%arg0: i32) -> (i32, i32) {
    %c0_i32 = arith.constant 0 : i32
    %c0_i32_0 = arith.constant 0 : i32
    return %arg0, %c0_i32 : i32, i32
  }
}

</mosaic_0001>

<bundles_post_ra>
// kernel: _lambda_.1
= control target key start
LH: loop header
LB: loop body
LE: loop exit
PB: predicated region body
PF: predicated region fallthrough
CT: control target
= control target key end

     0   :  { %15 = vsyncpa [#allocation3], 0  ;;  %s7034_s0 = inlined_call_operand.vmem [shape: f32[8,64], index: 0, kind: input, shape index: {}]   ;;  %s7035_s1 = inlined_call_operand.hbm [shape: bf16[64,1792], index: 1, kind: input, shape index: {}]   ;;  %s7036_s2 = inlined_call_operand.hbm [shape: bf16[896,768], index: 2, kind: input, shape index: {}]   ;;  %s7037_s3 = inlined_call_operand.hbm [shape: f32[1,768], index: 3, kind: input, shape index: {}]   ;;  %s7038_s4 = inlined_call_operand.hbm [shape: bf16[384,768], index: 4, kind: input, shape index: {}]   ;;  %s7039_s5 = inlined_call_operand.hbm [shape: f32[1,768], index: 5, kind: input, shape index: {}]   ;;  %s7040_s6 = inlined_call_operand.hbm [shape: bf16[384,128], index: 6, kind: input, shape index: {}]   ;;  %s7041_s7 = inlined_call_operand.hbm [shape: f32[1,128], index: 7, kind: input, shape index: {}]   ;;  %s7042_s8 = inlined_call_operand.hbm [shape: bf16[128,128], index: 8, kind: input, shape index: {}]   ;;  %s7043_s9 = inlined_call_operand.hbm [shape: f32[1,128], index: 9, kind: input, shape index: {}]   ;;  %s7044_s10 = inlined_call_operand.vmem [shape: f32[8,128], index: 10, kind: output, shape index: {}]  }
   0x1   :  { %16 = vsyncpa [#allocation5], 0 }
   0x2   :  { %17 = vsyncpa [#allocation8], 0 }
   0x3   :  { %18 = vsyncpa [#allocation11], 0 }
   0x4   :  { %19 = vsyncpa [#allocation14], 0  ;;  %s6694_s13 = smov [#allocation4]   ;;  %s6486_s17 = scalar_lea.hbm %s7036_s2, 43008 }
   0x5   :  { %s39_s14 = sshll.u32 %s6694_s13, 4  ;;  %p6487_p0 = scmp.ne.s32.totalorder %s7036_s2, %s6486_s17  ;;  %s40_s14 = int_to_ptr.vmem [resolvable:$true] %s39_s14 }
   0x6   :  { %p6490_p1 = scmp.lt.u32.totalorder %s6486_s17, %s7036_s2 }
   0x8   :  { %p6492_p2 = pnand %p6490_p1, %p6487_p0 }
   0xa   :  { %6495 = shalt.err (!%p6492_p2)
}
   0xb   :  { %s6496_s22 = scalar_lea.vmem %s40_s14, 43008  ;;  %p6501_p4 = scmp.lt.s32.totalorder %s40_s14, %s40_s14 }
   0xc   :  { %p6497_p3 = scmp.ne.s32.totalorder %s40_s14, %s6496_s22  ;;  %p6502_p5 = scmp.lt.s32.totalorder %s6496_s22, %s6496_s22 }
   0xe   :  { %p6503_p6 = por %p6502_p5, %p6501_p4 }
  0x10   :  { %p6504_p7 = pnand %p6503_p6, %p6497_p3 }
  0x12   :  { %6507 = shalt.err (!%p6504_p7)
}
  0x13   :  { %s6695_s23 = smov 384   ;;  %s6696_s24 = smov 24  }
  0x14   :  { %45 = dma.hbm_to_vmem [thread:$0]  %s7036_s2, 43008, %s40_s14, [#allocation5], %s6695_s23, %s6695_s23, %s6696_s24  }
  0x15   :  { %s6697_s27 = smov [#allocation7]   ;;  %s6698_s29 = smov [#allocation10]  }
  0x16   :  { %s61_s28 = sshll.u32 %s6697_s27, 4  ;;  %s83_s30 = sshll.u32 %s6698_s29, 4  ;;  %s62_s28 = int_to_ptr.vmem [resolvable:$true] %s61_s28  ;;  %s84_s30 = int_to_ptr.vmem [resolvable:$true] %s83_s30 }
  0x17   :  { %s6508_s13 = scalar_lea.hbm %s7038_s4, 18432 }
  0x18   :  { %p6509_p8 = scmp.ne.s32.totalorder %s7038_s4, %s6508_s13  ;;  %p6512_p9 = scmp.lt.u32.totalorder %s6508_s13, %s7038_s4 }
  0x1a   :  { %p6514_p10 = pnand %p6512_p9, %p6509_p8 }
  0x1c   :  { %6517 = shalt.err (!%p6514_p10)
}
  0x1d   :  { %s6518_s2 = scalar_lea.vmem %s62_s28, 18432  ;;  %p6523_p12 = scmp.lt.s32.totalorder %s62_s28, %s62_s28 }
  0x1e   :  { %p6519_p11 = scmp.ne.s32.totalorder %s62_s28, %s6518_s2  ;;  %p6524_p13 = scmp.lt.s32.totalorder %s6518_s2, %s6518_s2 }
  0x20   :  { %p6525_p0 = por %p6524_p13, %p6523_p12 }
  0x22   :  { %p6526_p1 = pnand %p6525_p0, %p6519_p11 }
  0x24   :  { %6529 = shalt.err (!%p6526_p1)
}
  0x25   :  { %67 = dma.hbm_to_vmem [thread:$0]  %s7038_s4, 18432, %s62_s28, [#allocation8], %s6695_s23, %s6695_s23, %s6696_s24  }
  0x26   :  { %s6530_s22 = scalar_lea.hbm %s7040_s6, 3072 }
  0x27   :  { %p6531_p2 = scmp.ne.s32.totalorder %s7040_s6, %s6530_s22  ;;  %p6534_p3 = scmp.lt.u32.totalorder %s6530_s22, %s7040_s6 }
  0x29   :  { %p6536_p4 = pnand %p6534_p3, %p6531_p2 }
  0x2b   :  { %6539 = shalt.err (!%p6536_p4)
}
  0x2c   :  { %s6540_s11 = scalar_lea.vmem %s84_s30, 3072  ;;  %p6545_p6 = scmp.lt.s32.totalorder %s84_s30, %s84_s30 }
  0x2d   :  { %p6541_p5 = scmp.ne.s32.totalorder %s84_s30, %s6540_s11  ;;  %p6546_p7 = scmp.lt.s32.totalorder %s6540_s11, %s6540_s11 }
  0x2f   :  { %p6547_p8 = por %p6546_p7, %p6545_p6 }
  0x31   :  { %p6548_p9 = pnand %p6547_p8, %p6541_p5 }
  0x33   :  { %6551 = shalt.err (!%p6548_p9)
}
  0x34   :  { %s6699_s4 = smov 64   ;;  %s6700_s23 = smov 4  }
  0x35   :  { %89 = dma.hbm_to_vmem [thread:$0]  %s7040_s6, 3072, %s84_s30, [#allocation11], %s6699_s4, %s6699_s4, %s6700_s23  }
  0x36   :  { %s6701_s12 = smov [#allocation13]   ;;  %s6702_s15 = smov [#allocation2]  }
  0x37   :  { %s105_s13 = sshll.u32 %s6701_s12, 4  ;;  %s27_s16 = sshll.u32 %s6702_s15, 4  ;;  %s106_s13 = int_to_ptr.vmem [resolvable:$true] %s105_s13  ;;  %s28_s16 = int_to_ptr.vmem [resolvable:$true] %s27_s16 }
  0x38   :  { %s6552_s2 = scalar_lea.hbm %s7042_s8, 1024 }
  0x39   :  { %p6553_p10 = scmp.ne.s32.totalorder %s7042_s8, %s6552_s2  ;;  %p6556_p11 = scmp.lt.u32.totalorder %s6552_s2, %s7042_s8 }
  0x3b   :  { %p6558_p12 = pnand %p6556_p11, %p6553_p10 }
  0x3d   :  { %6561 = shalt.err (!%p6558_p12)
}
  0x3e   :  { %s6562_s6 = scalar_lea.vmem %s106_s13, 1024  ;;  %p6567_p0 = scmp.lt.s32.totalorder %s106_s13, %s106_s13 }
  0x3f   :  { %p6563_p13 = scmp.ne.s32.totalorder %s106_s13, %s6562_s6  ;;  %p6568_p1 = scmp.lt.s32.totalorder %s6562_s6, %s6562_s6 }
  0x41   :  { %p6569_p2 = por %p6568_p1, %p6567_p0 }
  0x43   :  { %p6570_p3 = pnand %p6569_p2, %p6563_p13 }
  0x45   :  { %6573 = shalt.err (!%p6570_p3)
}
  0x46   :  { %111 = dma.hbm_to_vmem [thread:$0]  %s7042_s8, 1024, %s106_s13, [#allocation14], %s6699_s4, %s6699_s4, %s6700_s23  }
  0x47   :  { %s6574_s27 = scalar_lea.hbm %s7035_s1, 7168 }
  0x48   :  { %p6575_p4 = scmp.ne.s32.totalorder %s7035_s1, %s6574_s27  ;;  %p6578_p5 = scmp.lt.u32.totalorder %s6574_s27, %s7035_s1 }
  0x4a   :  { %p6580_p6 = pnand %p6578_p5, %p6575_p4 }
  0x4c   :  { %6583 = shalt.err (!%p6580_p6)
}
  0x4d   :  { %s6584_s12 = scalar_lea.vmem %s28_s16, 7168  ;;  %p6589_p8 = scmp.lt.s32.totalorder %s28_s16, %s28_s16 }
  0x4e   :  { %p6585_p7 = scmp.ne.s32.totalorder %s28_s16, %s6584_s12  ;;  %p6590_p9 = scmp.lt.s32.totalorder %s6584_s12, %s6584_s12 }
  0x50   :  { %p6591_p10 = por %p6590_p9, %p6589_p8 }
  0x52   :  { %p6592_p11 = pnand %p6591_p10, %p6585_p7 }
  0x54   :  { %6595 = shalt.err (!%p6592_p11)
}
  0x55   :  { %s6703_s8 = smov 896   ;;  %s6704_s4 = smov 56  }
  0x56   :  { %33 = dma.hbm_to_vmem [thread:$0]  %s7035_s1, 7168, %s28_s16, [#allocation3], %s6703_s8, %s6703_s8, %s6704_s4  }
  0x57   :  { %s6705_s15 = smov [#allocation6]   ;;  %s6706_s18 = smov [#allocation9]  }
  0x58   :  { %s52_s17 = sshll.u32 %s6705_s15, 4  ;;  %s74_s2 = sshll.u32 %s6706_s18, 4  ;;  %s53_s17 = int_to_ptr.vmem [resolvable:$true] %s52_s17  ;;  %s75_s2 = int_to_ptr.vmem [resolvable:$true] %s74_s2 }
  0x59   :  { %s6596_s20 = scalar_lea.hbm %s7037_s3, 96 }
  0x5a   :  { %p6597_p12 = scmp.ne.s32.totalorder %s7037_s3, %s6596_s20  ;;  %p6600_p13 = scmp.lt.u32.totalorder %s6596_s20, %s7037_s3 }
  0x5c   :  { %p6602_p0 = pnand %p6600_p13, %p6597_p12 }
  0x5e   :  { %6605 = shalt.err (!%p6602_p0)
}
  0x5f   :  { %s6606_s1 = scalar_lea.vmem %s53_s17, 96  ;;  %p6611_p2 = scmp.lt.s32.totalorder %s53_s17, %s53_s17 }
  0x60   :  { %p6607_p1 = scmp.ne.s32.totalorder %s53_s17, %s6606_s1  ;;  %p6612_p3 = scmp.lt.s32.totalorder %s6606_s1, %s6606_s1 }
  0x62   :  { %p6613_p4 = por %p6612_p3, %p6611_p2 }
  0x64   :  { %p6614_p5 = pnand %p6613_p4, %p6607_p1 }
  0x66   :  { %6617 = shalt.err (!%p6614_p5)
}
  0x67   :  { %55 = dma.hbm_to_vmem [thread:$0]  %s7037_s3, 96, %s53_s17, [#allocation5]  }
  0x68   :  { %s6618_s29 = scalar_lea.hbm %s7039_s5, 96 }
  0x69   :  { %p6619_p6 = scmp.ne.s32.totalorder %s7039_s5, %s6618_s29  ;;  %p6622_p7 = scmp.lt.u32.totalorder %s6618_s29, %s7039_s5 }
  0x6b   :  { %p6624_p8 = pnand %p6622_p7, %p6619_p6 }
  0x6d   :  { %6627 = shalt.err (!%p6624_p8)
}
  0x6e   :  { %s6628_s8 = scalar_lea.vmem %s75_s2, 96  ;;  %p6633_p10 = scmp.lt.s32.totalorder %s75_s2, %s75_s2 }
  0x6f   :  { %p6629_p9 = scmp.ne.s32.totalorder %s75_s2, %s6628_s8  ;;  %p6634_p11 = scmp.lt.s32.totalorder %s6628_s8, %s6628_s8 }
  0x71   :  { %p6635_p12 = por %p6634_p11, %p6633_p10 }
  0x73   :  { %p6636_p13 = pnand %p6635_p12, %p6629_p9 }
  0x75   :  { %6639 = shalt.err (!%p6636_p13)
}
  0x76   :  { %77 = dma.hbm_to_vmem [thread:$0]  %s7039_s5, 96, %s75_s2, [#allocation8]  }
  0x77   :  { %s6707_s23 = smov [#allocation12]   ;;  %s6708_s15 = smov [#allocation15]  }
  0x78   :  { %s96_s13 = sshll.u32 %s6707_s23, 4  ;;  %s118_s17 = sshll.u32 %s6708_s15, 4  ;;  %s97_s13 = int_to_ptr.vmem [resolvable:$true] %s96_s13  ;;  %s119_s17 = int_to_ptr.vmem [resolvable:$true] %s118_s17 }
  0x79   :  { %s6640_s19 = scalar_lea.hbm %s7041_s7, 16 }
  0x7a   :  { %p6641_p0 = scmp.ne.s32.totalorder %s7041_s7, %s6640_s19  ;;  %p6644_p1 = scmp.lt.u32.totalorder %s6640_s19, %s7041_s7 }
  0x7c   :  { %p6646_p2 = pnand %p6644_p1, %p6641_p0 }
  0x7e   :  { %6649 = shalt.err (!%p6646_p2)
}
  0x7f   :  { %s6650_s5 = scalar_lea.vmem %s97_s13, 16  ;;  %s6654_s2 = scalar_lea.vmem %s97_s13, 32 }
  0x80   :  { %p6651_p3 = scmp.ne.s32.totalorder %s97_s13, %s6650_s5  ;;  %p6655_p4 = scmp.lt.s32.totalorder %s97_s13, %s97_s13 }
  0x81   :  { %p6656_p5 = scmp.lt.s32.totalorder %s6654_s2, %s6650_s5 }
  0x83   :  { %p6657_p6 = por %p6656_p5, %p6655_p4 }
  0x85   :  { %p6658_p7 = pnand %p6657_p6, %p6651_p3 }
  0x87   :  { %6661 = shalt.err (!%p6658_p7)
}
  0x88   :  { %99 = dma.hbm_to_vmem [thread:$0]  %s7041_s7, 16, %s97_s13, [#allocation11]  }
  0x89   :  { %s6662_s26 = scalar_lea.hbm %s7043_s9, 16 }
  0x8a   :  { %p6663_p8 = scmp.ne.s32.totalorder %s7043_s9, %s6662_s26  ;;  %p6666_p9 = scmp.lt.u32.totalorder %s6662_s26, %s7043_s9 }
  0x8c   :  { %p6668_p10 = pnand %p6666_p9, %p6663_p8 }
  0x8e   :  { %6671 = shalt.err (!%p6668_p10)
}
  0x8f   :  { %s6672_s28 = scalar_lea.vmem %s119_s17, 16  ;;  %s6676_s12 = scalar_lea.vmem %s119_s17, 32 }
  0x90   :  { %p6673_p11 = scmp.ne.s32.totalorder %s119_s17, %s6672_s28  ;;  %p6677_p12 = scmp.lt.s32.totalorder %s119_s17, %s119_s17 }
  0x91   :  { %p6678_p13 = scmp.lt.s32.totalorder %s6676_s12, %s6672_s28 }
  0x93   :  { %p6679_p0 = por %p6678_p13, %p6677_p12 }
  0x95   :  { %p6680_p1 = pnand %p6679_p0, %p6673_p11 }
  0x97   :  { %6683 = shalt.err (!%p6680_p1)
}
  0x98   :  { %121 = dma.hbm_to_vmem [thread:$0]  %s7043_s9, 16, %s119_s17, [#allocation14]  }
  0x99   :  { %6684 = dma.done.wait [#allocation3], 7168  }
  0x9a   :  { %6685 = vsyncadd [#allocation3], 4294960128 }
  0x9b   :  { %6686 = dma.done.wait [#allocation5], 43104  }
  0x9c   :  { %6687 = vsyncadd [#allocation5], 4294924192 }
  0x9d   :  { %6688 = dma.done.wait [#allocation8], 18528  }
  0x9e   :  { %6689 = vsyncadd [#allocation8], 4294948768 }
  0x9f   :  { %6690 = dma.done.wait [#allocation11], 3088  }
  0xa0   :  { %6691 = vsyncadd [#allocation11], 4294964208 }
  0xa1   :  { %6692 = dma.done.wait [#allocation14], 1040  }
  0xa2   :  { %6693 = vsyncadd [#allocation14], 4294966256  ;;  %v6709_v0 = vmov 0   ;;  %v5650_v1 = vld [vmem:[#allocation2 + $0x4] ss:$56 sps:$4 sm:$0xff]   ;;  %vm488_vm0 = vcmask 523264  }
  0xa3   :  { %524 = vmatprep.mubr.bf16.mxu0 %v6709_v0  ;;  %565 = vmatprep.mubr.bf16.mxu1 %v6709_v0  ;;  %v5652_v2 = vld [vmem:[#allocation2 + $0xc] ss:$56 sps:$4 sm:$0xff]   ;;  %v5654_v3 = vld [vmem:[#allocation2] ss:$56 sps:$4 sm:$0xff]   ;;  %v5658_v6 = vld [vmem:[#allocation2 + $0x7c] ss:$56 sps:$4 sm:$0xff]  }
  0xa4   :  { %492 = vmatprep.subr.bf16.mxu0 %v5650_v1  ;;  %v5655_v4 = vld [vmem:[#allocation2 + $0x8] ss:$56 sps:$4 sm:$0xff]   ;;  %533 = vmatprep.subr.bf16.mxu1 %v5652_v2  ;;  %v5656_v5 = vld [vmem:[#allocation2 + $0x74] ss:$56 sps:$4 sm:$0xff]   ;;  %v5661_v8 = vld [vmem:[#allocation2 + $0x78] ss:$56 sps:$4 sm:$0xff]  }
  0xa5   :  { %493 = vmatpush1.bf16.msra.mxu0 %v5654_v3  ;;  %534 = vmatpush1.bf16.msra.mxu1 %v5655_v4  ;;  %v5660_v7 = vld [vmem:[#allocation2 + $0x70] ss:$56 sps:$4 sm:$0xff]   ;;  %v5662_v9 = vld [vmem:[#allocation2 + $0xe4] ss:$56 sps:$4 sm:$0xff]   ;;  %v5666_v11 = vld [vmem:[#allocation2 + $0xe0] ss:$56 sps:$4 sm:$0xff]  }
  0xa6   :  { %494 = vmatprep.subr.bf16.mxu0 %v5656_v5  ;;  %535 = vmatprep.subr.bf16.mxu1 %v5658_v6  ;;  %v5664_v10 = vld [vmem:[#allocation2 + $0xec] ss:$56 sps:$4 sm:$0xff]   ;;  %v5667_v12 = vld [vmem:[#allocation2 + $0xe8] ss:$56 sps:$4 sm:$0xff]   ;;  %v5670_v14 = vld [vmem:[#allocation2 + $0x15c] ss:$56 sps:$4 sm:$0xff]  }
  0xa7   :  { %v5668_v13 = vld [vmem:[#allocation2 + $0x154] ss:$56 sps:$4 sm:$0xff]   ;;  %v5672_v15 = vld [vmem:[#allocation2 + $0x150] ss:$56 sps:$4 sm:$0xff]   ;;  %v150_v17 = vld [vmem:[%s7034_s0] sm:$0xff]  ;;  %vm6711_vm1 = vmmov 0  }
  0xa8   :  { %v5673_v16 = vld [vmem:[#allocation2 + $0x158] ss:$56 sps:$4 sm:$0xff]   ;;  %v5676_v18 = vld [vmem:[#allocation2 + $0x14] ss:$56 sps:$4 sm:$0xff]   ;;  %v6880_v20 = vpack.c.bf16 %v150_v17, %v150_v17  ;;  %v5682_v23 = vld [vmem:[#allocation2 + $0x84] ss:$56 sps:$4 sm:$0xff]  }
  0xa9   :  { %495 = vmatpush1.bf16.msra.mxu0 %v5660_v7  ;;  %536 = vmatpush1.bf16.msra.mxu1 %v5661_v8  ;;  %v5679_v19 = vld [vmem:[#allocation2 + $0x1c] ss:$56 sps:$4 sm:$0xff]   ;;  %v5674_v21 = vld [vmem:[#allocation2 + $0x10] ss:$56 sps:$4 sm:$0xff]   ;;  %v5685_v24 = vld [vmem:[#allocation2 + $0x8c] ss:$56 sps:$4 sm:$0xff]  }
  0xaa   :  { %496 = vmatprep.subr.bf16.mxu0 %v5662_v9  ;;  %537 = vmatprep.subr.bf16.mxu1 %v5664_v10  ;;  %v5677_v22 = vld [vmem:[#allocation2 + $0x18] ss:$56 sps:$4 sm:$0xff]   ;;  %v5683_v26 = vld [vmem:[#allocation2 + $0x88] ss:$56 sps:$4 sm:$0xff]   ;;  %v5688_v27 = vld [vmem:[#allocation2 + $0xf4] ss:$56 sps:$4 sm:$0xff]  }
  0xab   :  { %v5680_v25 = vld [vmem:[#allocation2 + $0x80] ss:$56 sps:$4 sm:$0xff]   ;;  %v5691_v28 = vld [vmem:[#allocation2 + $0xfc] ss:$56 sps:$4 sm:$0xff]   ;;  %v5686_v29 = vld [vmem:[#allocation2 + $0xf0] ss:$56 sps:$4 sm:$0xff]  }
  0xac   :  { %v5689_v30 = vld [vmem:[#allocation2 + $0xf8] ss:$56 sps:$4 sm:$0xff]   ;;  %v5694_v31 = vld [vmem:[#allocation2 + $0x164] ss:$56 sps:$4 sm:$0xff]   ;;  %v5695_v34 = vld [vmem:[#allocation2 + $0x168] ss:$56 sps:$4 sm:$0xff]  }
  0xad   :  { %497 = vmatpush1.bf16.msra.mxu0 %v5666_v11  ;;  %538 = vmatpush1.bf16.msra.mxu1 %v5667_v12  ;;  %v5697_v32 = vld [vmem:[#allocation2 + $0x16c] ss:$56 sps:$4 sm:$0xff]   ;;  %v5692_v33 = vld [vmem:[#allocation2 + $0x160] ss:$56 sps:$4 sm:$0xff]   ;;  %v5709_v40 = vld [vmem:[#allocation2 + $0x9c] ss:$56 sps:$4 sm:$0xff]  }
  0xae   :  { %498 = vmatprep.subr.bf16.mxu0 %v5668_v13  ;;  %539 = vmatprep.subr.bf16.mxu1 %v5670_v14  ;;  %v5700_v35 = vld [vmem:[#allocation2 + $0x24] ss:$56 sps:$4 sm:$0xff]   ;;  %v5698_v37 = vld [vmem:[#allocation2 + $0x20] ss:$56 sps:$4 sm:$0xff]   ;;  %v5706_v39 = vld [vmem:[#allocation2 + $0x94] ss:$56 sps:$4 sm:$0xff]  }
  0xaf   :  { %v5703_v36 = vld [vmem:[#allocation2 + $0x2c] ss:$56 sps:$4 sm:$0xff]   ;;  %v5701_v38 = vld [vmem:[#allocation2 + $0x28] ss:$56 sps:$4 sm:$0xff]   ;;  %v5707_v42 = vld [vmem:[#allocation2 + $0x98] ss:$56 sps:$4 sm:$0xff]  }
  0xb0   :  { %v5704_v41 = vld [vmem:[#allocation2 + $0x90] ss:$56 sps:$4 sm:$0xff]   ;;  %v5712_v43 = vld [vmem:[#allocation2 + $0x104] ss:$56 sps:$4 sm:$0xff]   ;;  %v5710_v45 = vld [vmem:[#allocation2 + $0x100] ss:$56 sps:$4 sm:$0xff]  }
  0xb1   :  { %499 = vmatpush1.bf16.msra.mxu0 %v5672_v15  ;;  %540 = vmatpush1.bf16.msra.mxu1 %v5673_v16  ;;  %v5715_v44 = vld [vmem:[#allocation2 + $0x10c] ss:$56 sps:$4 sm:$0xff]   ;;  %v5713_v46 = vld [vmem:[#allocation2 + $0x108] ss:$56 sps:$4 sm:$0xff]   ;;  %v5721_v48 = vld [vmem:[#allocation2 + $0x17c] ss:$56 sps:$4 sm:$0xff]  }
  0xb2   :  { %574 = vmatprep.subr.bf16.mxu0 %v5676_v18  ;;  %615 = vmatprep.subr.bf16.mxu1 %v5679_v19  ;;  %v5718_v47 = vld [vmem:[#allocation2 + $0x174] ss:$56 sps:$4 sm:$0xff]   ;;  %v5716_v49 = vld [vmem:[#allocation2 + $0x170] ss:$56 sps:$4 sm:$0xff]   ;;  %v5736_v52 = vld [vmem:[#allocation4 + $0x4] ss:$24 sps:$4 sm:$0xff]  }
  0xb3   :  { %v5719_v50 = vld [vmem:[#allocation2 + $0x178] ss:$56 sps:$4 sm:$0xff]   ;;  %v5724_v51 = vld [vmem:[#allocation2 + $0x34] ss:$56 sps:$4 sm:$0xff]   ;;  %v5727_v54 = vld [vmem:[#allocation2 + $0xa4] ss:$56 sps:$4 sm:$0xff]  }
  0xb4   :  { %4971 = vmatmul.mubr.msk.bf16.vlgmr.msra.gmra.mrb[0].mxu0 %vm488_vm0, %v6880_v20  ;;  %4972 = vmatmul.mubr.msk.bf16.vlgmr.msra.gmra.mrb[0].mxu1 %vm488_vm0, %v6880_v20  ;;  %v5722_v53 = vld [vmem:[#allocation2 + $0x30] ss:$56 sps:$4 sm:$0xff]   ;;  %v5734_v55 = vld [vmem:[#allocation4] ss:$24 sps:$4 sm:$0xff]   ;;  %v5742_v56 = vld [vmem:[#allocation4 + $0x34] ss:$24 sps:$4 sm:$0xff]  }
  0xb5   :  { %575 = vmatpush1.bf16.msra.mxu0 %v5674_v21  ;;  %616 = vmatpush1.bf16.msra.mxu1 %v5677_v22  ;;  %v5725_v57 = vld [vmem:[#allocation2 + $0xa0] ss:$56 sps:$4 sm:$0xff]   ;;  %v5730_v58 = vld [vmem:[#allocation2 + $0x114] ss:$56 sps:$4 sm:$0xff]   ;;  %v5740_v59 = vld [vmem:[#allocation4 + $0x30] ss:$24 sps:$4 sm:$0xff]  }
  0xb6   :  { %576 = vmatprep.subr.bf16.mxu0 %v5682_v23  ;;  %617 = vmatprep.subr.bf16.mxu1 %v5685_v24  ;;  %v5728_v60 = vld [vmem:[#allocation2 + $0x110] ss:$56 sps:$4 sm:$0xff]   ;;  %v5748_v61 = vld [vmem:[#allocation4 + $0x64] ss:$24 sps:$4 sm:$0xff]   ;;  %v5746_v63 = vld [vmem:[#allocation4 + $0x60] ss:$24 sps:$4 sm:$0xff]  }
  0xb7   :  { %606 = vmatprep.mubr.bf16.mxu0 %v6709_v0  ;;  %647 = vmatprep.mubr.bf16.mxu1 %v6709_v0  ;;  %v5733_v62 = vld [vmem:[#allocation2 + $0x184] ss:$56 sps:$4 sm:$0xff]   ;;  %v5754_v1 = vld [vmem:[#allocation4 + $0x94] ss:$24 sps:$4 sm:$0xff]   ;;  %v5731_v2 = vld [vmem:[#allocation2 + $0x180] ss:$56 sps:$4 sm:$0xff]  }
  0xb8   :  { %v5739_v3 = vld [vmem:[#allocation4 + $0xc] ss:$24 sps:$4 sm:$0xff]   ;;  %v5752_v4 = vld [vmem:[#allocation4 + $0x90] ss:$24 sps:$4 sm:$0xff]   ;;  %v5745_v7 = vld [vmem:[#allocation4 + $0x3c] ss:$24 sps:$4 sm:$0xff]  }
  0xb9   :  { %577 = vmatpush1.bf16.msra.mxu0 %v5680_v25  ;;  %618 = vmatpush1.bf16.msra.mxu1 %v5683_v26  ;;  %v5760_v5 = vld [vmem:[#allocation4 + $0xc4] ss:$24 sps:$4 sm:$0xff]   ;;  %v5737_v6 = vld [vmem:[#allocation4 + $0x8] ss:$24 sps:$4 sm:$0xff]   ;;  %v5766_v9 = vld [vmem:[#allocation4 + $0xf4] ss:$24 sps:$4 sm:$0xff]  }
  0xba   :  { %578 = vmatprep.subr.bf16.mxu0 %v5688_v27  ;;  %619 = vmatprep.subr.bf16.mxu1 %v5691_v28  ;;  %v5758_v8 = vld [vmem:[#allocation4 + $0xc0] ss:$24 sps:$4 sm:$0xff]   ;;  %v5751_v11 = vld [vmem:[#allocation4 + $0x6c] ss:$24 sps:$4 sm:$0xff]   ;;  %v5764_v12 = vld [vmem:[#allocation4 + $0xf0] ss:$24 sps:$4 sm:$0xff]  }
  0xbb   :  { %v5743_v10 = vld [vmem:[#allocation4 + $0x38] ss:$24 sps:$4 sm:$0xff]   ;;  %v5772_v13 = vld [vmem:[#allocation4 + $0x124] ss:$24 sps:$4 sm:$0xff]   ;;  %v5749_v14 = vld [vmem:[#allocation4 + $0x68] ss:$24 sps:$4 sm:$0xff]  }
  0xbc   :  { %v5757_v15 = vld [vmem:[#allocation4 + $0x9c] ss:$24 sps:$4 sm:$0xff]   ;;  %v5770_v16 = vld [vmem:[#allocation4 + $0x120] ss:$24 sps:$4 sm:$0xff]   ;;  %v5763_v18 = vld [vmem:[#allocation4 + $0xcc] ss:$24 sps:$4 sm:$0xff]  }
  0xbd   :  { %579 = vmatpush1.bf16.msra.mxu0 %v5686_v29  ;;  %620 = vmatpush1.bf16.msra.mxu1 %v5689_v30  ;;  %v5755_v17 = vld [vmem:[#allocation4 + $0x98] ss:$24 sps:$4 sm:$0xff]   ;;  %v5761_v19 = vld [vmem:[#allocation4 + $0xc8] ss:$24 sps:$4 sm:$0xff]   ;;  %v5775_v22 = vld [vmem:[#allocation4 + $0x12c] ss:$24 sps:$4 sm:$0xff]  }
  0xbe   :  { %580 = vmatprep.subr.bf16.mxu0 %v5694_v31  ;;  %621 = vmatprep.subr.bf16.mxu1 %v5697_v32  ;;  %v5767_v21 = vld [vmem:[#allocation4 + $0xf8] ss:$24 sps:$4 sm:$0xff]   ;;  %v5773_v23 = vld [vmem:[#allocation4 + $0x128] ss:$24 sps:$4 sm:$0xff]   ;;  %v5778_v24 = vld [vmem:[#allocation4 + $0x154] ss:$24 sps:$4 sm:$0xff]  }
  0xbf   :  { %v5781_v25 = vld [vmem:[#allocation4 + $0x15c] ss:$24 sps:$4 sm:$0xff]   ;;  %v5776_v26 = vld [vmem:[#allocation4 + $0x150] ss:$24 sps:$4 sm:$0xff]   ;;  %v5782_v29 = vld [vmem:[#allocation4 + $0x180] ss:$24 sps:$4 sm:$0xff]  }
  0xc0   :  { %v5779_v27 = vld [vmem:[#allocation4 + $0x158] ss:$24 sps:$4 sm:$0xff]   ;;  %v5784_v28 = vld [vmem:[#allocation4 + $0x184] ss:$24 sps:$4 sm:$0xff]   ;;  %v5785_v30 = vld [vmem:[#allocation4 + $0x188] ss:$24 sps:$4 sm:$0xff]  }
  0xc1   :  { %581 = vmatpush1.bf16.msra.mxu0 %v5692_v33  ;;  %622 = vmatpush1.bf16.msra.mxu1 %v5695_v34  ;;  %v5787_v31 = vld [vmem:[#allocation4 + $0x18c] ss:$24 sps:$4 sm:$0xff]   ;;  %v5793_v33 = vld [vmem:[#allocation4 + $0x1bc] ss:$24 sps:$4 sm:$0xff]   ;;  %v5788_v34 = vld [vmem:[#allocation4 + $0x1b0] ss:$24 sps:$4 sm:$0xff]  }
  0xc2   :  { %656 = vmatprep.subr.bf16.mxu0 %v5700_v35  ;;  %697 = vmatprep.subr.bf16.mxu1 %v5703_v36  ;;  %v5790_v32 = vld [vmem:[#allocation4 + $0x1b4] ss:$24 sps:$4 sm:$0xff]   ;;  %v5791_v35 = vld [vmem:[#allocation4 + $0x1b8] ss:$24 sps:$4 sm:$0xff]   ;;  %v5796_v36 = vld [vmem:[#allocation4 + $0x1e4] ss:$24 sps:$4 sm:$0xff]  }
  0xc4   :  { %4973 = vmatmul.mubr.msk.bf16.vlgmr.msra.gmra.mrb[4].mxu0 %vm488_vm0, %v6880_v20  ;;  %4974 = vmatmul.mubr.msk.bf16.vlgmr.msra.gmra.mrb[4].mxu1 %vm488_vm0, %v6880_v20 }
  0xc5   :  { %657 = vmatpush1.bf16.msra.mxu0 %v5698_v37  ;;  %698 = vmatpush1.bf16.msra.mxu1 %v5701_v38  ;;  %v5799_v37 = vld [vmem:[#allocation4 + $0x1ec] ss:$24 sps:$4 sm:$0xff]   ;;  %v5794_v38 = vld [vmem:[#allocation4 + $0x1e0] ss:$24 sps:$4 sm:$0xff]  }
  0xc6   :  { %658 = vmatprep.subr.bf16.mxu0 %v5706_v39  ;;  %699 = vmatprep.subr.bf16.mxu1 %v5709_v40  ;;  %v5797_v39 = vld [vmem:[#allocation4 + $0x1e8] ss:$24 sps:$4 sm:$0xff]   ;;  %v5802_v40 = vld [vmem:[#allocation4 + $0x214] ss:$24 sps:$4 sm:$0xff]  }
  0xc7   :  { %688 = vmatprep.mubr.bf16.mxu0 %v6709_v0  ;;  %729 = vmatprep.mubr.bf16.mxu1 %v6709_v0 }
  0xc9   :  { %659 = vmatpush1.bf16.msra.mxu0 %v5704_v41  ;;  %700 = vmatpush1.bf16.msra.mxu1 %v5707_v42  ;;  %v5805_v41 = vld [vmem:[#allocation4 + $0x21c] ss:$24 sps:$4 sm:$0xff]   ;;  %v5800_v42 = vld [vmem:[#allocation4 + $0x210] ss:$24 sps:$4 sm:$0xff]  }
  0xca   :  { %660 = vmatprep.subr.bf16.mxu0 %v5712_v43  ;;  %701 = vmatprep.subr.bf16.mxu1 %v5715_v44  ;;  %v5803_v43 = vld [vmem:[#allocation4 + $0x218] ss:$24 sps:$4 sm:$0xff]   ;;  %v5808_v44 = vld [vmem:[#allocation4 + $0x244] ss:$24 sps:$4 sm:$0xff]  }
  0xcd   :  { %661 = vmatpush1.bf16.msra.mxu0 %v5710_v45  ;;  %702 = vmatpush1.bf16.msra.mxu1 %v5713_v46  ;;  %v5811_v45 = vld [vmem:[#allocation4 + $0x24c] ss:$24 sps:$4 sm:$0xff]   ;;  %v5806_v46 = vld [vmem:[#allocation4 + $0x240] ss:$24 sps:$4 sm:$0xff]  }
  0xce   :  { %662 = vmatprep.subr.bf16.mxu0 %v5718_v47  ;;  %703 = vmatprep.subr.bf16.mxu1 %v5721_v48  ;;  %v5809_v47 = vld [vmem:[#allocation4 + $0x248] ss:$24 sps:$4 sm:$0xff]   ;;  %v5814_v48 = vld [vmem:[#allocation4 + $0x274] ss:$24 sps:$4 sm:$0xff]  }
  0xd1   :  { %663 = vmatpush1.bf16.msra.mxu0 %v5716_v49  ;;  %704 = vmatpush1.bf16.msra.mxu1 %v5719_v50  ;;  %v5817_v49 = vld [vmem:[#allocation4 + $0x27c] ss:$24 sps:$4 sm:$0xff]   ;;  %v5812_v50 = vld [vmem:[#allocation4 + $0x270] ss:$24 sps:$4 sm:$0xff]  }
  0xd2   :  { %738 = vmatprep.subr.bf16.mxu0 %v5724_v51  ;;  %2855 = vmatprep.subr.bf16.mxu1 %v5736_v52  ;;  %v5815_v51 = vld [vmem:[#allocation4 + $0x278] ss:$24 sps:$4 sm:$0xff]   ;;  %v5820_v52 = vld [vmem:[#allocation4 + $0x2a4] ss:$24 sps:$4 sm:$0xff]  }
  0xd4   :  { %4975 = vmatmul.mubr.msk.bf16.vlgmr.msra.gmra.mrb[8].mxu0 %vm488_vm0, %v6880_v20  ;;  %4976 = vmatmul.mubr.msk.bf16.vlgmr.msra.gmra.mrb[8].mxu1 %vm488_vm0, %v6880_v20 }
  0xd5   :  { %739 = vmatpush1.bf16.msra.mxu0 %v5722_v53  ;;  %770 = vmatprep.mubr.bf16.mxu0 %v6709_v0  ;;  %v5823_v53 = vld [vmem:[#allocation4 + $0x2ac] ss:$24 sps:$4 sm:$0xff]  }
  0xd6   :  { %740 = vmatprep.subr.bf16.mxu0 %v5727_v54  ;;  %2856 = vmatpush1.bf16.msra.mxu1 %v5734_v55  ;;  %v5818_v54 = vld [vmem:[#allocation4 + $0x2a0] ss:$24 sps:$4 sm:$0xff]  }
  0xd7   :  { %2857 = vmatprep.subr.bf16.mxu1 %v5742_v56  ;;  %v5821_v55 = vld [vmem:[#allocation4 + $0x2a8] ss:$24 sps:$4 sm:$0xff]   ;;  %v5826_v56 = vld [vmem:[#allocation4 + $0x2d4] ss:$24 sps:$4 sm:$0xff]  }
  0xd9   :  { %741 = vmatpush1.bf16.msra.mxu0 %v5725_v57  ;;  %v5829_v57 = vld [vmem:[#allocation4 + $0x2dc] ss:$24 sps:$4 sm:$0xff]  }
  0xda   :  { %742 = vmatprep.subr.bf16.mxu0 %v5730_v58  ;;  %2858 = vmatpush1.bf16.msra.mxu1 %v5740_v59  ;;  %v5824_v58 = vld [vmem:[#allocation4 + $0x2d0] ss:$24 sps:$4 sm:$0xff]  }
  0xdb   :  { %2859 = vmatprep.subr.bf16.mxu1 %v5748_v61  ;;  %v5827_v59 = vld [vmem:[#allocation4 + $0x2d8] ss:$24 sps:$4 sm:$0xff]   ;;  %v5835_v61 = vld [vmem:[#allocation4 + $0x30c] ss:$24 sps:$4 sm:$0xff]  }
  0xdd   :  { %743 = vmatpush1.bf16.msra.mxu0 %v5728_v60  ;;  %v5832_v60 = vld [vmem:[#allocation4 + $0x304] ss:$24 sps:$4 sm:$0xff]  }
  0xde   :  { %744 = vmatprep.subr.bf16.mxu0 %v5733_v62  ;;  %2860 = vmatpush1.bf16.msra.mxu1 %v5746_v63 }
  0xdf   :  { %2861 = vmatprep.subr.bf16.mxu1 %v5754_v1 }
  0xe1   :  { %745 = vmatpush1.bf16.msra.mxu0 %v5731_v2 }
  0xe2   :  { %3019 = vmatprep.subr.bf16.mxu0 %v5739_v3  ;;  %2862 = vmatpush1.bf16.msra.mxu1 %v5752_v4 }
  0xe3   :  { %2863 = vmatprep.subr.bf16.mxu1 %v5760_v5 }
  0xe4   :  { %4977 = vmatmul.mubr.msk.bf16.vlgmr.msra.gmra.mrb[12].mxu0 %vm488_vm0, %v6880_v20  ;;  %v5769_v20 = vld [vmem:[#allocation4 + $0xfc] ss:$24 sps:$4 sm:$0xff]  }
  0xe5   :  { %3020 = vmatpush1.bf16.msra.mxu0 %v5737_v6 }
  0xe6   :  { %3021 = vmatprep.subr.bf16.mxu0 %v5745_v7  ;;  %2864 = vmatpush1.bf16.msra.mxu1 %v5758_v8 }
  0xe7   :  { %2865 = vmatprep.subr.bf16.mxu1 %v5766_v9 }
  0xe9   :  { %3022 = vmatpush1.bf16.msra.mxu0 %v5743_v10 }
  0xea   :  { %3023 = vmatprep.subr.bf16.mxu0 %v5751_v11  ;;  %2866 = vmatpush1.bf16.msra.mxu1 %v5764_v12 }
  0xeb   :  { %2867 = vmatprep.subr.bf16.mxu1 %v5772_v13 }
  0xed   :  { %3024 = vmatpush1.bf16.msra.mxu0 %v5749_v14 }
  0xee   :  { %3025 = vmatprep.subr.bf16.mxu0 %v5757_v15  ;;  %2868 = vmatpush1.bf16.msra.mxu1 %v5770_v16 }
  0xef   :  { %2869 = vmatprep.subr.bf16.mxu1 %v5778_v24 }
  0xf1   :  { %3026 = vmatpush1.bf16.msra.mxu0 %v5755_v17 }
  0xf2   :  { %3027 = vmatprep.subr.bf16.mxu0 %v5763_v18  ;;  %2870 = vmatpush1.bf16.msra.mxu1 %v5776_v26 }
  0xf3   :  { %2871 = vmatprep.subr.bf16.mxu1 %v5784_v28 }
  0xf5   :  { %3028 = vmatpush1.bf16.msra.mxu0 %v5761_v19 }
  0xf6   :  { %3029 = vmatprep.subr.bf16.mxu0 %v5769_v20  ;;  %2872 = vmatpush1.bf16.msra.mxu1 %v5782_v29 }
  0xf7   :  { %2873 = vmatprep.subr.bf16.mxu1 %v5790_v32 }
  0xf9   :  { %3030 = vmatpush1.bf16.msra.mxu0 %v5767_v21 }
  0xfa   :  { %3031 = vmatprep.subr.bf16.mxu0 %v5775_v22  ;;  %2874 = vmatpush1.bf16.msra.mxu1 %v5788_v34 }
  0xfb   :  { %2875 = vmatprep.subr.bf16.mxu1 %v5796_v36 }
  0xfd   :  { %3032 = vmatpush1.bf16.msra.mxu0 %v5773_v23 }
  0xfe   :  { %3033 = vmatprep.subr.bf16.mxu0 %v5781_v25  ;;  %2876 = vmatpush1.bf16.msra.mxu1 %v5794_v38 }
  0xff   :  { %2877 = vmatprep.subr.bf16.mxu1 %v5802_v40 }
 0x101   :  { %3034 = vmatpush1.bf16.msra.mxu0 %v5779_v27 }
 0x102   :  { %3035 = vmatprep.subr.bf16.mxu0 %v5787_v31  ;;  %2878 = vmatpush1.bf16.msra.mxu1 %v5800_v42  ;;  %v5838_v42 = vld [vmem:[#allocation4 + $0x334] ss:$24 sps:$4 sm:$0xff]  }
 0x103   :  { %2879 = vmatprep.subr.bf16.mxu1 %v5808_v44 }
 0x105   :  { %3036 = vmatpush1.bf16.msra.mxu0 %v5785_v30 }
 0x106   :  { %3037 = vmatprep.subr.bf16.mxu0 %v5793_v33  ;;  %2880 = vmatpush1.bf16.msra.mxu1 %v5806_v46  ;;  %v5839_v46 = vld [vmem:[#allocation4 + $0x338] ss:$24 sps:$4 sm:$0xff]  }
 0x107   :  { %2881 = vmatprep.subr.bf16.mxu1 %v5814_v48  ;;  %v5847_v48 = vld [vmem:[#allocation4 + $0x36c] ss:$24 sps:$4 sm:$0xff]  }
 0x109   :  { %3038 = vmatpush1.bf16.msra.mxu0 %v5791_v35  ;;  %v5830_v35 = vld [vmem:[#allocation4 + $0x300] ss:$24 sps:$4 sm:$0xff]  }
 0x10a   :  { %3039 = vmatprep.subr.bf16.mxu0 %v5799_v37  ;;  %2882 = vmatpush1.bf16.msra.mxu1 %v5812_v50  ;;  %v5845_v50 = vld [vmem:[#allocation4 + $0x368] ss:$24 sps:$4 sm:$0xff]  }
 0x10b   :  { %2883 = vmatprep.subr.bf16.mxu1 %v5820_v52  ;;  %v5853_v52 = vld [vmem:[#allocation4 + $0x39c] ss:$24 sps:$4 sm:$0xff]  }
 0x10d   :  { %3040 = vmatpush1.bf16.msra.mxu0 %v5797_v39  ;;  %v5833_v39 = vld [vmem:[#allocation4 + $0x308] ss:$24 sps:$4 sm:$0xff]  }
 0x10e   :  { %3041 = vmatprep.subr.bf16.mxu0 %v5805_v41  ;;  %2884 = vmatpush1.bf16.msra.mxu1 %v5818_v54  ;;  %v5851_v54 = vld [vmem:[#allocation4 + $0x398] ss:$24 sps:$4 sm:$0xff]  }
 0x10f   :  { %2885 = vmatprep.subr.bf16.mxu1 %v5826_v56 }
 0x111   :  { %3042 = vmatpush1.bf16.msra.mxu0 %v5803_v43  ;;  %v5841_v43 = vld [vmem:[#allocation4 + $0x33c] ss:$24 sps:$4 sm:$0xff]  }
 0x112   :  { %3043 = vmatprep.subr.bf16.mxu0 %v5811_v45  ;;  %2886 = vmatpush1.bf16.msra.mxu1 %v5824_v58  ;;  %v5836_v45 = vld [vmem:[#allocation4 + $0x330] ss:$24 sps:$4 sm:$0xff]  }
 0x113   :  { %2896 = vmatprep.subr.bf16.mxu1 %v5832_v60 }
 0x115   :  { %3044 = vmatpush1.bf16.msra.mxu0 %v5809_v47  ;;  %v5844_v47 = vld [vmem:[#allocation4 + $0x364] ss:$24 sps:$4 sm:$0xff]  }
 0x116   :  { %3045 = vmatprep.subr.bf16.mxu0 %v5817_v49  ;;  %v5842_v49 = vld [vmem:[#allocation4 + $0x360] ss:$24 sps:$4 sm:$0xff]  }
 0x119   :  { %3046 = vmatpush1.bf16.msra.mxu0 %v5815_v51  ;;  %v5850_v51 = vld [vmem:[#allocation4 + $0x394] ss:$24 sps:$4 sm:$0xff]  }
 0x11a   :  { %3047 = vmatprep.subr.bf16.mxu0 %v5823_v53  ;;  %v5848_v53 = vld [vmem:[#allocation4 + $0x390] ss:$24 sps:$4 sm:$0xff]  }
 0x11d   :  { %3048 = vmatpush1.bf16.msra.mxu0 %v5821_v55 }
 0x11e   :  { %3049 = vmatprep.subr.bf16.mxu0 %v5829_v57  ;;  %v5856_v57 = vld [vmem:[#allocation4 + $0x3c4] ss:$24 sps:$4 sm:$0xff]  }
 0x121   :  { %3050 = vmatpush1.bf16.msra.mxu0 %v5827_v59 }
 0x122   :  { %3060 = vmatprep.subr.bf16.mxu0 %v5835_v61 }
 0x187   :  { %v526_v62 = vpop.f32.mrb[0].mxu0  ;;  %v567_v63 = vpop.f32.mrb[0].mxu1 }
 0x188   :  { %v528_v1 = vpop.f32.mrb[1].mxu0  ;;  %v569_v2 = vpop.f32.mrb[1].mxu1  ;;  %v779_v11 = vmax.f32 %v526_v62, 0.0  ;;  %v781_v26 = vmax.f32 %v567_v63, 0.0  ;;  %v5859_v62 = vld [vmem:[#allocation4 + $0x3cc] ss:$24 sps:$4 sm:$0xff]  }
 0x189   :  { %v530_v3 = vpop.f32.mrb[2].mxu0  ;;  %v571_v4 = vpop.f32.mrb[2].mxu1  ;;  %v780_v18 = vmax.f32 %v528_v1, 0.0  ;;  %v782_v19 = vmax.f32 %v569_v2, 0.0  ;;  %v5854_v2 = vld [vmem:[#allocation4 + $0x3c0] ss:$24 sps:$4 sm:$0xff]  }
 0x18a   :  { %v531_v5 = vpop.f32.mrb[3].mxu0  ;;  %v572_v6 = vpop.f32.mrb[3].mxu1  ;;  %v5857_v3 = vld [vmem:[#allocation4 + $0x3c8] ss:$24 sps:$4 sm:$0xff]  }
 0x18b   :  { %v5862_v6 = vld [vmem:[#allocation4 + $0x3f4] ss:$24 sps:$4 sm:$0xff]  }
 0x197   :  { %v608_v7 = vpop.f32.mrb[4].mxu0  ;;  %v6901_v8 = vpop.f32.mrb[4].mxu1 }
 0x198   :  { %v6903_v9 = vpop.f32.mrb[5].mxu0  ;;  %v651_v10 = vpop.f32.mrb[5].mxu1  ;;  %v783_v27 = vmax.f32 %v608_v7, 0.0  ;;  %v785_v60 = vmax.f32 %v6901_v8, 0.0  ;;  %v5865_v7 = vld [vmem:[#allocation4 + $0x3fc] ss:$24 sps:$4 sm:$0xff]  }
 0x199   :  { %v786_v12 = vmax.f32 %v651_v10, 0.0  ;;  %v612_v13 = vpop.f32.mrb[6].mxu0  ;;  %v653_v14 = vpop.f32.mrb[6].mxu1  ;;  %v784_v55 = vmax.f32 %v6903_v9, 0.0  ;;  %v5860_v9 = vld [vmem:[#allocation4 + $0x3f0] ss:$24 sps:$4 sm:$0xff]  }
 0x19a   :  { %v613_v15 = vpop.f32.mrb[7].mxu0  ;;  %v654_v16 = vpop.f32.mrb[7].mxu1  ;;  %v5863_v8 = vld [vmem:[#allocation4 + $0x3f8] ss:$24 sps:$4 sm:$0xff]   ;;  %v5868_v10 = vld [vmem:[#allocation4 + $0x424] ss:$24 sps:$4 sm:$0xff]  }
 0x19b   :  { %v793_v17 = vmax.f32 %v779_v11, %v786_v12  ;;  %v5871_v11 = vld [vmem:[#allocation4 + $0x42c] ss:$24 sps:$4 sm:$0xff]   ;;  %v5866_v12 = vld [vmem:[#allocation4 + $0x420] ss:$24 sps:$4 sm:$0xff]   ;;  %v5877_v15 = vld [vmem:[#allocation4 + $0x45c] ss:$24 sps:$4 sm:$0xff]  }
 0x19c   :  { %v5869_v13 = vld [vmem:[#allocation4 + $0x428] ss:$24 sps:$4 sm:$0xff]   ;;  %v5874_v14 = vld [vmem:[#allocation4 + $0x454] ss:$24 sps:$4 sm:$0xff]  }
 0x19d   :  { %v6911_v41 = vpack.c.bf16 %v793_v17, %v793_v17  ;;  %v5872_v16 = vld [vmem:[#allocation4 + $0x450] ss:$24 sps:$4 sm:$0xff]  }
 0x19e   :  { %v5875_v17 = vld [vmem:[#allocation4 + $0x458] ss:$24 sps:$4 sm:$0xff]  }
 0x1a7   :  { %v690_v20 = vpop.f32.mrb[8].mxu0  ;;  %v731_v21 = vpop.f32.mrb[8].mxu1 }
 0x1a8   :  { %v787_v22 = vmax.f32 %v690_v20, 0.0  ;;  %v789_v23 = vmax.f32 %v731_v21, 0.0  ;;  %v692_v24 = vpop.f32.mrb[9].mxu0  ;;  %v733_v25 = vpop.f32.mrb[9].mxu1  ;;  %v5878_v20 = vld [vmem:[#allocation4 + $0x480] ss:$24 sps:$4 sm:$0xff]  }
 0x1a9   :  { %v788_v28 = vmax.f32 %v692_v24, 0.0  ;;  %v790_v29 = vmax.f32 %v733_v25, 0.0  ;;  %v694_v30 = vpop.f32.mrb[10].mxu0  ;;  %v735_v31 = vpop.f32.mrb[10].mxu1  ;;  %v5881_v21 = vld [vmem:[#allocation4 + $0x488] ss:$24 sps:$4 sm:$0xff]  }
 0x1aa   :  { %v794_v32 = vmax.f32 %v780_v18, %v787_v22  ;;  %v796_v33 = vmax.f32 %v782_v19, %v789_v23  ;;  %v695_v34 = vpop.f32.mrb[11].mxu0  ;;  %v736_v36 = vpop.f32.mrb[11].mxu1  ;;  %v5880_v18 = vld [vmem:[#allocation4 + $0x484] ss:$24 sps:$4 sm:$0xff]   ;;  %v5886_v22 = vld [vmem:[#allocation4 + $0x4b4] ss:$24 sps:$4 sm:$0xff]  }
 0x1ab   :  { %v6905_v37 = vmax.f32 %v781_v26, %v788_v28  ;;  %v6907_v38 = vmax.f32 %v783_v27, %v790_v29  ;;  %v5883_v19 = vld [vmem:[#allocation4 + $0x48c] ss:$24 sps:$4 sm:$0xff]   ;;  %v5889_v23 = vld [vmem:[#allocation4 + $0x4bc] ss:$24 sps:$4 sm:$0xff]   ;;  %v5884_v24 = vld [vmem:[#allocation4 + $0x4b0] ss:$24 sps:$4 sm:$0xff]  }
 0x1ac   :  { %v6909_v40 = vpack.c.bf16 %v794_v32, %v794_v32  ;;  %v6915_v44 = vpack.c.bf16 %v796_v33, %v796_v33  ;;  %v5887_v25 = vld [vmem:[#allocation4 + $0x4b8] ss:$24 sps:$4 sm:$0xff]   ;;  %v5892_v26 = vld [vmem:[#allocation4 + $0x4e4] ss:$24 sps:$4 sm:$0xff]   ;;  %v5893_v29 = vld [vmem:[#allocation4 + $0x4e8] ss:$24 sps:$4 sm:$0xff]  }
 0x1ad   :  { %v5895_v27 = vld [vmem:[#allocation4 + $0x4ec] ss:$24 sps:$4 sm:$0xff]   ;;  %v5890_v28 = vld [vmem:[#allocation4 + $0x4e0] ss:$24 sps:$4 sm:$0xff]   ;;  %v5901_v31 = vld [vmem:[#allocation4 + $0x51c] ss:$24 sps:$4 sm:$0xff]  }
 0x1ae   :  { %2887 = vmatprep.mubr.bf16.mxu1 %v6909_v40  ;;  %3051 = vmatprep.mubr.bf16.mxu0 %v6909_v40  ;;  %v5898_v30 = vld [vmem:[#allocation4 + $0x514] ss:$24 sps:$4 sm:$0xff]   ;;  %v5896_v32 = vld [vmem:[#allocation4 + $0x510] ss:$24 sps:$4 sm:$0xff]   ;;  %v5904_v34 = vld [vmem:[#allocation4 + $0x544] ss:$24 sps:$4 sm:$0xff]  }
 0x1af   :  { %2888 = vmatmul.mubr.bf16.vlgmr.msra.gmra.mrb[12].mxu1 %v6911_v41  ;;  %3052 = vmatmul.mubr.bf16.vlgmr.msra.gmra.mrb[16].mxu0 %v6911_v41  ;;  %v5899_v33 = vld [vmem:[#allocation4 + $0x518] ss:$24 sps:$4 sm:$0xff]  }
 0x1b0   :  { %2897 = vmatpush1.bf16.msra.mxu1 %v5830_v35  ;;  %3061 = vmatpush1.bf16.msra.mxu0 %v5833_v39  ;;  %v5907_v35 = vld [vmem:[#allocation4 + $0x54c] ss:$24 sps:$4 sm:$0xff]   ;;  %v5902_v36 = vld [vmem:[#allocation4 + $0x540] ss:$24 sps:$4 sm:$0xff]  }
 0x1b1   :  { %2928 = vmatprep.mubr.bf16.mxu1 %v6915_v44  ;;  %3092 = vmatprep.mubr.bf16.mxu0 %v6915_v44  ;;  %v5905_v39 = vld [vmem:[#allocation4 + $0x548] ss:$24 sps:$4 sm:$0xff]  }
 0x1b2   :  { %2898 = vmatprep.subr.bf16.mxu1 %v5838_v42  ;;  %3062 = vmatprep.subr.bf16.mxu0 %v5841_v43  ;;  %v5910_v42 = vld [vmem:[#allocation4 + $0x574] ss:$24 sps:$4 sm:$0xff]  }
 0x1b3   :  { %v5913_v43 = vld [vmem:[#allocation4 + $0x57c] ss:$24 sps:$4 sm:$0xff]  }
 0x1b4   :  { %2899 = vmatpush1.bf16.msra.mxu1 %v5836_v45  ;;  %3063 = vmatpush1.bf16.msra.mxu0 %v5839_v46  ;;  %v5908_v45 = vld [vmem:[#allocation4 + $0x570] ss:$24 sps:$4 sm:$0xff]  }
 0x1b5   :  { %2900 = vmatprep.subr.bf16.mxu1 %v5844_v47  ;;  %3064 = vmatprep.subr.bf16.mxu0 %v5847_v48  ;;  %v5911_v46 = vld [vmem:[#allocation4 + $0x578] ss:$24 sps:$4 sm:$0xff]   ;;  %v5916_v47 = vld [vmem:[#allocation4 + $0x5a4] ss:$24 sps:$4 sm:$0xff]  }
 0x1b6   :  { %v5919_v48 = vld [vmem:[#allocation4 + $0x5ac] ss:$24 sps:$4 sm:$0xff]  }
 0x1b7   :  { %v772_v56 = vpop.f32.mrb[12].mxu0 }
 0x1b8   :  { %v791_v58 = vmax.f32 %v772_v56, 0.0  ;;  %2901 = vmatpush1.bf16.msra.mxu1 %v5842_v49  ;;  %3065 = vmatpush1.bf16.msra.mxu0 %v5845_v50  ;;  %v774_v59 = vpop.f32.mrb[13].mxu0  ;;  %v5914_v49 = vld [vmem:[#allocation4 + $0x5a0] ss:$24 sps:$4 sm:$0xff]   ;;  %v5931_v56 = vld [vmem:[#allocation4 + $0x60c] ss:$24 sps:$4 sm:$0xff]  }
 0x1b9   :  { %v792_v61 = vmax.f32 %v774_v59, 0.0  ;;  %2902 = vmatprep.subr.bf16.mxu1 %v5850_v51  ;;  %3066 = vmatprep.subr.bf16.mxu0 %v5853_v52  ;;  %v776_v63 = vpop.f32.mrb[14].mxu0  ;;  %v5917_v50 = vld [vmem:[#allocation4 + $0x5a8] ss:$24 sps:$4 sm:$0xff]   ;;  %v5922_v51 = vld [vmem:[#allocation4 + $0x5d4] ss:$24 sps:$4 sm:$0xff]  }
 0x1ba   :  { %v6923_v1 = vmax.f32 %v784_v55, %v791_v58  ;;  %v777_v4 = vpop.f32.mrb[15].mxu0  ;;  %v5925_v52 = vld [vmem:[#allocation4 + $0x5dc] ss:$24 sps:$4 sm:$0xff]   ;;  %v6929_v58 = vpack.c.bf16 %v6905_v37, %v6905_v37  ;;  %v5929_v59 = vld [vmem:[#allocation4 + $0x608] ss:$24 sps:$4 sm:$0xff]  }
 0x1bb   :  { %v6925_v5 = vmax.f32 %v785_v60, %v792_v61  ;;  %v5928_v55 = vld [vmem:[#allocation4 + $0x604] ss:$24 sps:$4 sm:$0xff]   ;;  %v5934_v61 = vld [vmem:[#allocation4 + $0x634] ss:$24 sps:$4 sm:$0xff]   ;;  %v5932_v63 = vld [vmem:[#allocation4 + $0x630] ss:$24 sps:$4 sm:$0xff]  }
 0x1bc   :  { %2903 = vmatpush1.bf16.msra.mxu1 %v5848_v53  ;;  %3067 = vmatpush1.bf16.msra.mxu0 %v5851_v54  ;;  %v5920_v53 = vld [vmem:[#allocation4 + $0x5d0] ss:$24 sps:$4 sm:$0xff]   ;;  %v6933_v60 = vpack.c.bf16 %v6923_v1, %v6923_v1  ;;  %v5938_v1 = vld [vmem:[#allocation4 + $0x660] ss:$24 sps:$4 sm:$0xff]  }
 0x1bd   :  { %2904 = vmatprep.subr.bf16.mxu1 %v5856_v57  ;;  %3068 = vmatprep.subr.bf16.mxu0 %v5859_v62  ;;  %v5923_v54 = vld [vmem:[#allocation4 + $0x5d8] ss:$24 sps:$4 sm:$0xff]   ;;  %v5937_v62 = vld [vmem:[#allocation4 + $0x63c] ss:$24 sps:$4 sm:$0xff]   ;;  %v5941_v4 = vld [vmem:[#allocation4 + $0x668] ss:$24 sps:$4 sm:$0xff]  }
 0x1be   :  { %v5926_v57 = vld [vmem:[#allocation4 + $0x600] ss:$24 sps:$4 sm:$0xff]  }
 0x1bf   :  { %v5935_v37 = vld [vmem:[#allocation4 + $0x638] ss:$24 sps:$4 sm:$0xff]  }
 0x1c0   :  { %2905 = vmatpush1.bf16.msra.mxu1 %v5854_v2  ;;  %3069 = vmatpush1.bf16.msra.mxu0 %v5857_v3  ;;  %v5940_v2 = vld [vmem:[#allocation4 + $0x664] ss:$24 sps:$4 sm:$0xff]  }
 0x1c1   :  { %2906 = vmatprep.subr.bf16.mxu1 %v5862_v6  ;;  %3070 = vmatprep.subr.bf16.mxu0 %v5865_v7  ;;  %v5943_v3 = vld [vmem:[#allocation4 + $0x66c] ss:$24 sps:$4 sm:$0xff]   ;;  %v5949_v7 = vld [vmem:[#allocation4 + $0x69c] ss:$24 sps:$4 sm:$0xff]  }
 0x1c2   :  { %v5946_v6 = vld [vmem:[#allocation4 + $0x694] ss:$24 sps:$4 sm:$0xff]  }
 0x1c4   :  { %2907 = vmatpush1.bf16.msra.mxu1 %v5860_v9  ;;  %3071 = vmatpush1.bf16.msra.mxu0 %v5863_v8  ;;  %v5944_v9 = vld [vmem:[#allocation4 + $0x690] ss:$24 sps:$4 sm:$0xff]  }
 0x1c5   :  { %2908 = vmatprep.subr.bf16.mxu1 %v5868_v10  ;;  %3072 = vmatprep.subr.bf16.mxu0 %v5871_v11  ;;  %v5947_v8 = vld [vmem:[#allocation4 + $0x698] ss:$24 sps:$4 sm:$0xff]   ;;  %v5952_v10 = vld [vmem:[#allocation4 + $0x6c4] ss:$24 sps:$4 sm:$0xff]  }
 0x1c6   :  { %v5955_v11 = vld [vmem:[#allocation4 + $0x6cc] ss:$24 sps:$4 sm:$0xff]  }
 0x1c8   :  { %2909 = vmatpush1.bf16.msra.mxu1 %v5866_v12  ;;  %3073 = vmatpush1.bf16.msra.mxu0 %v5869_v13  ;;  %v5950_v12 = vld [vmem:[#allocation4 + $0x6c0] ss:$24 sps:$4 sm:$0xff]  }
 0x1c9   :  { %2910 = vmatprep.subr.bf16.mxu1 %v5874_v14  ;;  %3074 = vmatprep.subr.bf16.mxu0 %v5877_v15  ;;  %v5953_v13 = vld [vmem:[#allocation4 + $0x6c8] ss:$24 sps:$4 sm:$0xff]   ;;  %v5958_v14 = vld [vmem:[#allocation4 + $0x6f4] ss:$24 sps:$4 sm:$0xff]  }
 0x1ca   :  { %v5961_v15 = vld [vmem:[#allocation4 + $0x6fc] ss:$24 sps:$4 sm:$0xff]  }
 0x1cc   :  { %2911 = vmatpush1.bf16.msra.mxu1 %v5872_v16  ;;  %3075 = vmatpush1.bf16.msra.mxu0 %v5875_v17  ;;  %v5956_v16 = vld [vmem:[#allocation4 + $0x6f0] ss:$24 sps:$4 sm:$0xff]  }
 0x1cd   :  { %2912 = vmatprep.subr.bf16.mxu1 %v5880_v18  ;;  %3076 = vmatprep.subr.bf16.mxu0 %v5883_v19  ;;  %v5959_v17 = vld [vmem:[#allocation4 + $0x6f8] ss:$24 sps:$4 sm:$0xff]   ;;  %v5964_v18 = vld [vmem:[#allocation4 + $0x724] ss:$24 sps:$4 sm:$0xff]  }
 0x1ce   :  { %v5967_v19 = vld [vmem:[#allocation4 + $0x72c] ss:$24 sps:$4 sm:$0xff]  }
 0x1d0   :  { %2913 = vmatpush1.bf16.msra.mxu1 %v5878_v20  ;;  %3077 = vmatpush1.bf16.msra.mxu0 %v5881_v21  ;;  %v5962_v20 = vld [vmem:[#allocation4 + $0x720] ss:$24 sps:$4 sm:$0xff]  }
 0x1d1   :  { %2914 = vmatprep.subr.bf16.mxu1 %v5886_v22  ;;  %3078 = vmatprep.subr.bf16.mxu0 %v5889_v23  ;;  %v5965_v21 = vld [vmem:[#allocation4 + $0x728] ss:$24 sps:$4 sm:$0xff]   ;;  %v5970_v22 = vld [vmem:[#allocation4 + $0x754] ss:$24 sps:$4 sm:$0xff]  }
 0x1d2   :  { %v5973_v23 = vld [vmem:[#allocation4 + $0x75c] ss:$24 sps:$4 sm:$0xff]  }
 0x1d4   :  { %2915 = vmatpush1.bf16.msra.mxu1 %v5884_v24  ;;  %3079 = vmatpush1.bf16.msra.mxu0 %v5887_v25  ;;  %v5968_v24 = vld [vmem:[#allocation4 + $0x750] ss:$24 sps:$4 sm:$0xff]  }
 0x1d5   :  { %2916 = vmatprep.subr.bf16.mxu1 %v5892_v26  ;;  %3080 = vmatprep.subr.bf16.mxu0 %v5895_v27  ;;  %v5971_v25 = vld [vmem:[#allocation4 + $0x758] ss:$24 sps:$4 sm:$0xff]   ;;  %v5976_v26 = vld [vmem:[#allocation4 + $0x784] ss:$24 sps:$4 sm:$0xff]  }
 0x1d6   :  { %v5979_v27 = vld [vmem:[#allocation4 + $0x78c] ss:$24 sps:$4 sm:$0xff]  }
 0x1d8   :  { %2917 = vmatpush1.bf16.msra.mxu1 %v5890_v28  ;;  %3081 = vmatpush1.bf16.msra.mxu0 %v5893_v29  ;;  %v5974_v28 = vld [vmem:[#allocation4 + $0x780] ss:$24 sps:$4 sm:$0xff]  }
 0x1d9   :  { %2918 = vmatprep.subr.bf16.mxu1 %v5898_v30  ;;  %3082 = vmatprep.subr.bf16.mxu0 %v5901_v31  ;;  %v5977_v29 = vld [vmem:[#allocation4 + $0x788] ss:$24 sps:$4 sm:$0xff]   ;;  %v5982_v30 = vld [vmem:[#allocation4 + $0x7b4] ss:$24 sps:$4 sm:$0xff]  }
 0x1da   :  { %v5985_v31 = vld [vmem:[#allocation4 + $0x7bc] ss:$24 sps:$4 sm:$0xff]  }
 0x1dc   :  { %2919 = vmatpush1.bf16.msra.mxu1 %v5896_v32  ;;  %3083 = vmatpush1.bf16.msra.mxu0 %v5899_v33  ;;  %v5980_v32 = vld [vmem:[#allocation4 + $0x7b0] ss:$24 sps:$4 sm:$0xff]  }
 0x1dd   :  { %2920 = vmatprep.subr.bf16.mxu1 %v5904_v34  ;;  %3084 = vmatprep.subr.bf16.mxu0 %v5907_v35  ;;  %v5983_v33 = vld [vmem:[#allocation4 + $0x7b8] ss:$24 sps:$4 sm:$0xff]   ;;  %v5988_v34 = vld [vmem:[#allocation4 + $0x7e4] ss:$24 sps:$4 sm:$0xff]  }
 0x1de   :  { %v5991_v35 = vld [vmem:[#allocation4 + $0x7ec] ss:$24 sps:$4 sm:$0xff]  }
 0x1e0   :  { %2921 = vmatpush1.bf16.msra.mxu1 %v5902_v36  ;;  %3085 = vmatpush1.bf16.msra.mxu0 %v5905_v39  ;;  %v5986_v36 = vld [vmem:[#allocation4 + $0x7e0] ss:$24 sps:$4 sm:$0xff]  }
 0x1e1   :  { %2922 = vmatprep.subr.bf16.mxu1 %v5910_v42  ;;  %3086 = vmatprep.subr.bf16.mxu0 %v5913_v43  ;;  %v5989_v39 = vld [vmem:[#allocation4 + $0x7e8] ss:$24 sps:$4 sm:$0xff]   ;;  %v5994_v42 = vld [vmem:[#allocation4 + $0x814] ss:$24 sps:$4 sm:$0xff]  }
 0x1e2   :  { %v5997_v43 = vld [vmem:[#allocation4 + $0x81c] ss:$24 sps:$4 sm:$0xff]  }
 0x1e4   :  { %2923 = vmatpush1.bf16.msra.mxu1 %v5908_v45  ;;  %3087 = vmatpush1.bf16.msra.mxu0 %v5911_v46  ;;  %v5992_v45 = vld [vmem:[#allocation4 + $0x810] ss:$24 sps:$4 sm:$0xff]  }
 0x1e5   :  { %2924 = vmatprep.subr.bf16.mxu1 %v5916_v47  ;;  %3088 = vmatprep.subr.bf16.mxu0 %v5919_v48  ;;  %v5995_v46 = vld [vmem:[#allocation4 + $0x818] ss:$24 sps:$4 sm:$0xff]   ;;  %v6000_v47 = vld [vmem:[#allocation4 + $0x844] ss:$24 sps:$4 sm:$0xff]  }
 0x1e6   :  { %v6003_v48 = vld [vmem:[#allocation4 + $0x84c] ss:$24 sps:$4 sm:$0xff]  }
 0x1e8   :  { %2925 = vmatpush1.bf16.msra.mxu1 %v5914_v49  ;;  %3089 = vmatpush1.bf16.msra.mxu0 %v5917_v50  ;;  %v5998_v49 = vld [vmem:[#allocation4 + $0x840] ss:$24 sps:$4 sm:$0xff]  }
 0x1e9   :  { %2926 = vmatprep.subr.bf16.mxu1 %v5922_v51  ;;  %3090 = vmatprep.subr.bf16.mxu0 %v5925_v52  ;;  %v6001_v50 = vld [vmem:[#allocation4 + $0x848] ss:$24 sps:$4 sm:$0xff]   ;;  %v6006_v51 = vld [vmem:[#allocation4 + $0x874] ss:$24 sps:$4 sm:$0xff]  }
 0x1ea   :  { %v6009_v52 = vld [vmem:[#allocation4 + $0x87c] ss:$24 sps:$4 sm:$0xff]  }
 0x1ec   :  { %2927 = vmatpush1.bf16.msra.mxu1 %v5920_v53  ;;  %3091 = vmatpush1.bf16.msra.mxu0 %v5923_v54  ;;  %v6004_v53 = vld [vmem:[#allocation4 + $0x870] ss:$24 sps:$4 sm:$0xff]  }
 0x1ed   :  { %2937 = vmatprep.subr.bf16.mxu1 %v5928_v55  ;;  %3101 = vmatprep.subr.bf16.mxu0 %v5931_v56  ;;  %v6007_v54 = vld [vmem:[#allocation4 + $0x878] ss:$24 sps:$4 sm:$0xff]   ;;  %v6012_v55 = vld [vmem:[#allocation4 + $0x8a4] ss:$24 sps:$4 sm:$0xff]  }
 0x1ee   :  { %v6015_v56 = vld [vmem:[#allocation4 + $0x8ac] ss:$24 sps:$4 sm:$0xff]  }
 0x1ef   :  { %2929 = vmatmul.mubr.bf16.vlgmr.msra.gmra.mrb[12].mxu1 %v6929_v58  ;;  %3093 = vmatmul.mubr.bf16.vlgmr.msra.gmra.mrb[16].mxu0 %v6929_v58 }
 0x1f0   :  { %2938 = vmatpush1.bf16.msra.mxu1 %v5926_v57  ;;  %2969 = vmatprep.mubr.bf16.mxu1 %v6933_v60  ;;  %v6010_v57 = vld [vmem:[#allocation4 + $0x8a0] ss:$24 sps:$4 sm:$0xff]  }
 0x1f1   :  { %3102 = vmatpush1.bf16.msra.mxu0 %v5929_v59  ;;  %3133 = vmatprep.mubr.bf16.mxu0 %v6933_v60  ;;  %v6013_v59 = vld [vmem:[#allocation4 + $0x8a8] ss:$24 sps:$4 sm:$0xff]  }
 0x1f2   :  { %2939 = vmatprep.subr.bf16.mxu1 %v5934_v61  ;;  %3103 = vmatprep.subr.bf16.mxu0 %v5937_v62  ;;  %v6018_v61 = vld [vmem:[#allocation4 + $0x8d4] ss:$24 sps:$4 sm:$0xff]  }
 0x1f3   :  { %v6021_v62 = vld [vmem:[#allocation4 + $0x8dc] ss:$24 sps:$4 sm:$0xff]  }
 0x1f4   :  { %2940 = vmatpush1.bf16.msra.mxu1 %v5932_v63  ;;  %v6016_v63 = vld [vmem:[#allocation4 + $0x8d0] ss:$24 sps:$4 sm:$0xff]  }
 0x1f5   :  { %3104 = vmatpush1.bf16.msra.mxu0 %v5935_v37  ;;  %2941 = vmatprep.subr.bf16.mxu1 %v5940_v2  ;;  %v6019_v37 = vld [vmem:[#allocation4 + $0x8d8] ss:$24 sps:$4 sm:$0xff]   ;;  %v6024_v2 = vld [vmem:[#allocation4 + $0x904] ss:$24 sps:$4 sm:$0xff]  }
 0x1f6   :  { %3105 = vmatprep.subr.bf16.mxu0 %v5943_v3  ;;  %v6027_v3 = vld [vmem:[#allocation4 + $0x90c] ss:$24 sps:$4 sm:$0xff]  }
 0x1f8   :  { %2942 = vmatpush1.bf16.msra.mxu1 %v5938_v1  ;;  %v6022_v1 = vld [vmem:[#allocation4 + $0x900] ss:$24 sps:$4 sm:$0xff]  }
 0x1f9   :  { %3106 = vmatpush1.bf16.msra.mxu0 %v5941_v4  ;;  %2943 = vmatprep.subr.bf16.mxu1 %v5946_v6  ;;  %v6941_v4 = vpack.c.bf16 %v6907_v38, %v6907_v38  ;;  %v6025_v6 = vld [vmem:[#allocation4 + $0x908] ss:$24 sps:$4 sm:$0xff]  }
 0x1fa   :  { %3107 = vmatprep.subr.bf16.mxu0 %v5949_v7  ;;  %v6030_v7 = vld [vmem:[#allocation4 + $0x934] ss:$24 sps:$4 sm:$0xff]   ;;  %v6034_v38 = vld [vmem:[#allocation4 + $0x960] ss:$24 sps:$4 sm:$0xff]  }
 0x1fc   :  { %2944 = vmatpush1.bf16.msra.mxu1 %v5944_v9  ;;  %v6033_v9 = vld [vmem:[#allocation4 + $0x93c] ss:$24 sps:$4 sm:$0xff]  }
 0x1fd   :  { %3108 = vmatpush1.bf16.msra.mxu0 %v5947_v8  ;;  %2945 = vmatprep.subr.bf16.mxu1 %v5952_v10  ;;  %v6028_v8 = vld [vmem:[#allocation4 + $0x930] ss:$24 sps:$4 sm:$0xff]  }
 0x1fe   :  { %3109 = vmatprep.subr.bf16.mxu0 %v5955_v11  ;;  %v6031_v10 = vld [vmem:[#allocation4 + $0x938] ss:$24 sps:$4 sm:$0xff]   ;;  %v6036_v11 = vld [vmem:[#allocation4 + $0x964] ss:$24 sps:$4 sm:$0xff]  }
 0x200   :  { %2946 = vmatpush1.bf16.msra.mxu1 %v5950_v12  ;;  %v6039_v12 = vld [vmem:[#allocation4 + $0x96c] ss:$24 sps:$4 sm:$0xff]  }
 0x201   :  { %3110 = vmatpush1.bf16.msra.mxu0 %v5953_v13  ;;  %2947 = vmatprep.subr.bf16.mxu1 %v5958_v14  ;;  %v6037_v13 = vld [vmem:[#allocation4 + $0x968] ss:$24 sps:$4 sm:$0xff]   ;;  %v6042_v14 = vld [vmem:[#allocation4 + $0x994] ss:$24 sps:$4 sm:$0xff]  }
 0x202   :  { %3111 = vmatprep.subr.bf16.mxu0 %v5961_v15  ;;  %v6045_v15 = vld [vmem:[#allocation4 + $0x99c] ss:$24 sps:$4 sm:$0xff]  }
 0x204   :  { %2948 = vmatpush1.bf16.msra.mxu1 %v5956_v16  ;;  %v6040_v16 = vld [vmem:[#allocation4 + $0x990] ss:$24 sps:$4 sm:$0xff]  }
 0x205   :  { %3112 = vmatpush1.bf16.msra.mxu0 %v5959_v17  ;;  %2949 = vmatprep.subr.bf16.mxu1 %v5964_v18  ;;  %v6043_v17 = vld [vmem:[#allocation4 + $0x998] ss:$24 sps:$4 sm:$0xff]   ;;  %v6048_v18 = vld [vmem:[#allocation4 + $0x9c4] ss:$24 sps:$4 sm:$0xff]  }
 0x206   :  { %3113 = vmatprep.subr.bf16.mxu0 %v5967_v19  ;;  %v6051_v19 = vld [vmem:[#allocation4 + $0x9cc] ss:$24 sps:$4 sm:$0xff]  }
 0x208   :  { %2950 = vmatpush1.bf16.msra.mxu1 %v5962_v20  ;;  %v6046_v20 = vld [vmem:[#allocation4 + $0x9c0] ss:$24 sps:$4 sm:$0xff]  }
 0x209   :  { %3114 = vmatpush1.bf16.msra.mxu0 %v5965_v21  ;;  %2951 = vmatprep.subr.bf16.mxu1 %v5970_v22  ;;  %v6049_v21 = vld [vmem:[#allocation4 + $0x9c8] ss:$24 sps:$4 sm:$0xff]   ;;  %v6054_v22 = vld [vmem:[#allocation4 + $0x9f4] ss:$24 sps:$4 sm:$0xff]  }
 0x20a   :  { %3115 = vmatprep.subr.bf16.mxu0 %v5973_v23  ;;  %v6057_v23 = vld [vmem:[#allocation4 + $0x9fc] ss:$24 sps:$4 sm:$0xff]  }
 0x20c   :  { %2952 = vmatpush1.bf16.msra.mxu1 %v5968_v24  ;;  %v6052_v24 = vld [vmem:[#allocation4 + $0x9f0] ss:$24 sps:$4 sm:$0xff]  }
 0x20d   :  { %3116 = vmatpush1.bf16.msra.mxu0 %v5971_v25  ;;  %2953 = vmatprep.subr.bf16.mxu1 %v5976_v26  ;;  %v6055_v25 = vld [vmem:[#allocation4 + $0x9f8] ss:$24 sps:$4 sm:$0xff]   ;;  %v6060_v26 = vld [vmem:[#allocation4 + $0xa24] ss:$24 sps:$4 sm:$0xff]  }
 0x20e   :  { %3117 = vmatprep.subr.bf16.mxu0 %v5979_v27  ;;  %v6063_v27 = vld [vmem:[#allocation4 + $0xa2c] ss:$24 sps:$4 sm:$0xff]  }
 0x210   :  { %2954 = vmatpush1.bf16.msra.mxu1 %v5974_v28  ;;  %v6058_v28 = vld [vmem:[#allocation4 + $0xa20] ss:$24 sps:$4 sm:$0xff]  }
 0x211   :  { %3118 = vmatpush1.bf16.msra.mxu0 %v5977_v29  ;;  %2955 = vmatprep.subr.bf16.mxu1 %v5982_v30  ;;  %v6061_v29 = vld [vmem:[#allocation4 + $0xa28] ss:$24 sps:$4 sm:$0xff]   ;;  %v6066_v30 = vld [vmem:[#allocation4 + $0xa54] ss:$24 sps:$4 sm:$0xff]  }
 0x212   :  { %3119 = vmatprep.subr.bf16.mxu0 %v5985_v31  ;;  %v6069_v31 = vld [vmem:[#allocation4 + $0xa5c] ss:$24 sps:$4 sm:$0xff]  }
 0x214   :  { %2956 = vmatpush1.bf16.msra.mxu1 %v5980_v32  ;;  %v6064_v32 = vld [vmem:[#allocation4 + $0xa50] ss:$24 sps:$4 sm:$0xff]  }
 0x215   :  { %3120 = vmatpush1.bf16.msra.mxu0 %v5983_v33  ;;  %2957 = vmatprep.subr.bf16.mxu1 %v5988_v34  ;;  %v6067_v33 = vld [vmem:[#allocation4 + $0xa58] ss:$24 sps:$4 sm:$0xff]   ;;  %v6072_v34 = vld [vmem:[#allocation4 + $0x14] ss:$24 sps:$4 sm:$0xff]  }
 0x216   :  { %3121 = vmatprep.subr.bf16.mxu0 %v5991_v35  ;;  %v6070_v35 = vld [vmem:[#allocation4 + $0x10] ss:$24 sps:$4 sm:$0xff]  }
 0x218   :  { %2958 = vmatpush1.bf16.msra.mxu1 %v5986_v36  ;;  %v6949_v36 = vpack.c.bf16 %v6925_v5, %v6925_v5  ;;  %v6079_v5 = vld [vmem:[#allocation4 + $0xa0] ss:$24 sps:$4 sm:$0xff]  }
 0x219   :  { %3122 = vmatpush1.bf16.msra.mxu0 %v5989_v39  ;;  %2959 = vmatprep.subr.bf16.mxu1 %v5994_v42  ;;  %v6075_v39 = vld [vmem:[#allocation4 + $0x44] ss:$24 sps:$4 sm:$0xff]   ;;  %v6073_v42 = vld [vmem:[#allocation4 + $0x40] ss:$24 sps:$4 sm:$0xff]  }
 0x21a   :  { %3123 = vmatprep.subr.bf16.mxu0 %v5997_v43  ;;  %v6078_v43 = vld [vmem:[#allocation4 + $0x74] ss:$24 sps:$4 sm:$0xff]  }
 0x21c   :  { %2960 = vmatpush1.bf16.msra.mxu1 %v5992_v45  ;;  %v6076_v45 = vld [vmem:[#allocation4 + $0x70] ss:$24 sps:$4 sm:$0xff]  }
 0x21d   :  { %3124 = vmatpush1.bf16.msra.mxu0 %v5995_v46  ;;  %2961 = vmatprep.subr.bf16.mxu1 %v6000_v47  ;;  %v6081_v46 = vld [vmem:[#allocation4 + $0xa4] ss:$24 sps:$4 sm:$0xff]   ;;  %v6084_v47 = vld [vmem:[#allocation4 + $0xd4] ss:$24 sps:$4 sm:$0xff]  }
 0x21e   :  { %3125 = vmatprep.subr.bf16.mxu0 %v6003_v48  ;;  %v6082_v48 = vld [vmem:[#allocation4 + $0xd0] ss:$24 sps:$4 sm:$0xff]  }
 0x220   :  { %2962 = vmatpush1.bf16.msra.mxu1 %v5998_v49  ;;  %v6087_v49 = vld [vmem:[#allocation4 + $0x104] ss:$24 sps:$4 sm:$0xff]  }
 0x221   :  { %3126 = vmatpush1.bf16.msra.mxu0 %v6001_v50  ;;  %2963 = vmatprep.subr.bf16.mxu1 %v6006_v51  ;;  %v6085_v50 = vld [vmem:[#allocation4 + $0x100] ss:$24 sps:$4 sm:$0xff]   ;;  %v6090_v51 = vld [vmem:[#allocation4 + $0x134] ss:$24 sps:$4 sm:$0xff]  }
 0x222   :  { %3127 = vmatprep.subr.bf16.mxu0 %v6009_v52  ;;  %v6093_v52 = vld [vmem:[#allocation4 + $0x164] ss:$24 sps:$4 sm:$0xff]  }
 0x224   :  { %2964 = vmatpush1.bf16.msra.mxu1 %v6004_v53  ;;  %v6091_v53 = vld [vmem:[#allocation4 + $0x160] ss:$24 sps:$4 sm:$0xff]  }
 0x225   :  { %3128 = vmatpush1.bf16.msra.mxu0 %v6007_v54  ;;  %2965 = vmatprep.subr.bf16.mxu1 %v6012_v55  ;;  %v6096_v54 = vld [vmem:[#allocation4 + $0x194] ss:$24 sps:$4 sm:$0xff]   ;;  %v6094_v55 = vld [vmem:[#allocation4 + $0x190] ss:$24 sps:$4 sm:$0xff]  }
 0x226   :  { %3129 = vmatprep.subr.bf16.mxu0 %v6015_v56  ;;  %v6099_v56 = vld [vmem:[#allocation4 + $0x1c4] ss:$24 sps:$4 sm:$0xff]  }
 0x228   :  { %2966 = vmatpush1.bf16.msra.mxu1 %v6010_v57  ;;  %v6097_v57 = vld [vmem:[#allocation4 + $0x1c0] ss:$24 sps:$4 sm:$0xff]  }
 0x229   :  { %3130 = vmatpush1.bf16.msra.mxu0 %v6013_v59  ;;  %2967 = vmatprep.subr.bf16.mxu1 %v6018_v61  ;;  %v6102_v59 = vld [vmem:[#allocation4 + $0x1f4] ss:$24 sps:$4 sm:$0xff]   ;;  %v6100_v61 = vld [vmem:[#allocation4 + $0x1f0] ss:$24 sps:$4 sm:$0xff]  }
 0x22a   :  { %3131 = vmatprep.subr.bf16.mxu0 %v6021_v62  ;;  %v6105_v62 = vld [vmem:[#allocation4 + $0x224] ss:$24 sps:$4 sm:$0xff]  }
 0x22c   :  { %2968 = vmatpush1.bf16.msra.mxu1 %v6016_v63  ;;  %v6103_v63 = vld [vmem:[#allocation4 + $0x220] ss:$24 sps:$4 sm:$0xff]  }
 0x22d   :  { %3132 = vmatpush1.bf16.msra.mxu0 %v6019_v37  ;;  %2978 = vmatprep.subr.bf16.mxu1 %v6024_v2  ;;  %v6108_v37 = vld [vmem:[#allocation4 + $0x254] ss:$24 sps:$4 sm:$0xff]   ;;  %v6106_v2 = vld [vmem:[#allocation4 + $0x250] ss:$24 sps:$4 sm:$0xff]  }
 0x22e   :  { %3142 = vmatprep.subr.bf16.mxu0 %v6027_v3  ;;  %v6111_v3 = vld [vmem:[#allocation4 + $0x284] ss:$24 sps:$4 sm:$0xff]  }
 0x22f   :  { %2970 = vmatmul.mubr.bf16.vlgmr.msra.gmra.mrb[12].mxu1 %v6941_v4 }
 0x230   :  { %3134 = vmatmul.mubr.bf16.vlgmr.msra.gmra.mrb[16].mxu0 %v6941_v4  ;;  %2979 = vmatpush1.bf16.msra.mxu1 %v6022_v1  ;;  %v6109_v1 = vld [vmem:[#allocation4 + $0x280] ss:$24 sps:$4 sm:$0xff]  }
 0x231   :  { %3143 = vmatpush1.bf16.msra.mxu0 %v6025_v6  ;;  %2980 = vmatprep.subr.bf16.mxu1 %v6030_v7  ;;  %v6114_v6 = vld [vmem:[#allocation4 + $0x2b4] ss:$24 sps:$4 sm:$0xff]   ;;  %v6112_v7 = vld [vmem:[#allocation4 + $0x2b0] ss:$24 sps:$4 sm:$0xff]  }
 0x232   :  { %3144 = vmatprep.subr.bf16.mxu0 %v6033_v9  ;;  %3010 = vmatprep.mubr.bf16.mxu1 %v6709_v0  ;;  %v6117_v9 = vld [vmem:[#allocation4 + $0x2e4] ss:$24 sps:$4 sm:$0xff]  }
 0x233   :  { %3174 = vmatprep.mubr.bf16.mxu0 %v6709_v0 }
 0x234   :  { %2981 = vmatpush1.bf16.msra.mxu1 %v6028_v8  ;;  %v6115_v8 = vld [vmem:[#allocation4 + $0x2e0] ss:$24 sps:$4 sm:$0xff]  }
 0x235   :  { %3145 = vmatpush1.bf16.msra.mxu0 %v6031_v10  ;;  %2982 = vmatprep.subr.bf16.mxu1 %v6036_v11  ;;  %v6120_v10 = vld [vmem:[#allocation4 + $0x314] ss:$24 sps:$4 sm:$0xff]   ;;  %v6118_v11 = vld [vmem:[#allocation4 + $0x310] ss:$24 sps:$4 sm:$0xff]  }
 0x236   :  { %3146 = vmatprep.subr.bf16.mxu0 %v6039_v12  ;;  %v6123_v12 = vld [vmem:[#allocation4 + $0x344] ss:$24 sps:$4 sm:$0xff]  }
 0x238   :  { %2983 = vmatpush1.bf16.msra.mxu1 %v6034_v38  ;;  %v6121_v38 = vld [vmem:[#allocation4 + $0x340] ss:$24 sps:$4 sm:$0xff]  }
 0x239   :  { %3147 = vmatpush1.bf16.msra.mxu0 %v6037_v13  ;;  %2984 = vmatprep.subr.bf16.mxu1 %v6042_v14  ;;  %v6126_v13 = vld [vmem:[#allocation4 + $0x374] ss:$24 sps:$4 sm:$0xff]   ;;  %v6124_v14 = vld [vmem:[#allocation4 + $0x370] ss:$24 sps:$4 sm:$0xff]  }
 0x23a   :  { %3148 = vmatprep.subr.bf16.mxu0 %v6045_v15  ;;  %v6129_v15 = vld [vmem:[#allocation4 + $0x3a4] ss:$24 sps:$4 sm:$0xff]  }
 0x23c   :  { %2985 = vmatpush1.bf16.msra.mxu1 %v6040_v16  ;;  %v6127_v16 = vld [vmem:[#allocation4 + $0x3a0] ss:$24 sps:$4 sm:$0xff]  }
 0x23d   :  { %3149 = vmatpush1.bf16.msra.mxu0 %v6043_v17  ;;  %2986 = vmatprep.subr.bf16.mxu1 %v6048_v18  ;;  %v6132_v17 = vld [vmem:[#allocation4 + $0x3d4] ss:$24 sps:$4 sm:$0xff]   ;;  %v6130_v18 = vld [vmem:[#allocation4 + $0x3d0] ss:$24 sps:$4 sm:$0xff]  }
 0x23e   :  { %3150 = vmatprep.subr.bf16.mxu0 %v6051_v19  ;;  %v6135_v19 = vld [vmem:[#allocation4 + $0x404] ss:$24 sps:$4 sm:$0xff]  }
 0x240   :  { %2987 = vmatpush1.bf16.msra.mxu1 %v6046_v20  ;;  %v6138_v20 = vld [vmem:[#allocation4 + $0x434] ss:$24 sps:$4 sm:$0xff]  }
 0x241   :  { %3151 = vmatpush1.bf16.msra.mxu0 %v6049_v21  ;;  %2988 = vmatprep.subr.bf16.mxu1 %v6054_v22  ;;  %v6141_v21 = vld [vmem:[#allocation4 + $0x464] ss:$24 sps:$4 sm:$0xff]   ;;  %v6139_v22 = vld [vmem:[#allocation4 + $0x460] ss:$24 sps:$4 sm:$0xff]  }
 0x242   :  { %3152 = vmatprep.subr.bf16.mxu0 %v6057_v23  ;;  %v6144_v23 = vld [vmem:[#allocation4 + $0x494] ss:$24 sps:$4 sm:$0xff]  }
 0x244   :  { %2989 = vmatpush1.bf16.msra.mxu1 %v6052_v24  ;;  %v6142_v24 = vld [vmem:[#allocation4 + $0x490] ss:$24 sps:$4 sm:$0xff]  }
 0x245   :  { %3153 = vmatpush1.bf16.msra.mxu0 %v6055_v25  ;;  %2990 = vmatprep.subr.bf16.mxu1 %v6060_v26  ;;  %v6147_v25 = vld [vmem:[#allocation4 + $0x4c4] ss:$24 sps:$4 sm:$0xff]  }
 0x246   :  { %3154 = vmatprep.subr.bf16.mxu0 %v6063_v27  ;;  %v6238_v26 = vld [vmem:[#allocation7] ss:$24 sps:$4 sm:$0xff]   ;;  %v6240_v27 = vld [vmem:[#allocation7 + $0x4] ss:$24 sps:$4 sm:$0xff]  }
 0x248   :  { %2991 = vmatpush1.bf16.msra.mxu1 %v6058_v28  ;;  %v6145_v28 = vld [vmem:[#allocation4 + $0x4c0] ss:$24 sps:$4 sm:$0xff]  }
 0x249   :  { %3155 = vmatpush1.bf16.msra.mxu0 %v6061_v29  ;;  %2992 = vmatprep.subr.bf16.mxu1 %v6066_v30  ;;  %v6243_v29 = vld [vmem:[#allocation7 + $0x34] ss:$24 sps:$4 sm:$0xff]  }
 0x24a   :  { %3156 = vmatprep.subr.bf16.mxu0 %v6069_v31  ;;  %v6150_v30 = vld [vmem:[#allocation4 + $0x4f4] ss:$24 sps:$4 sm:$0xff]  }
 0x24b   :  { %v6241_v31 = vld [vmem:[#allocation7 + $0x30] ss:$24 sps:$4 sm:$0xff]  }
 0x24c   :  { %2993 = vmatpush1.bf16.msra.mxu1 %v6064_v32  ;;  %v6246_v32 = vld [vmem:[#allocation7 + $0x64] ss:$24 sps:$4 sm:$0xff]  }
 0x24d   :  { %3157 = vmatpush1.bf16.msra.mxu0 %v6067_v33  ;;  %3183 = vmatprep.subr.bf16.mxu1 %v6072_v34  ;;  %v6148_v33 = vld [vmem:[#allocation4 + $0x4f0] ss:$24 sps:$4 sm:$0xff]   ;;  %v6153_v34 = vld [vmem:[#allocation4 + $0x524] ss:$24 sps:$4 sm:$0xff]  }
 0x24e   :  { %4255 = vmatprep.subr.bf16.mxu0 %v6240_v27  ;;  %v6196_v27 = vld [vmem:[#allocation4 + $0x7f0] ss:$24 sps:$4 sm:$0xff]  }
 0x24f   :  { %3011 = vmatmul.mubr.bf16.vlgmr.msra.gmra.mrb[12].mxu1 %v6949_v36 }
 0x250   :  { %3175 = vmatmul.mubr.bf16.vlgmr.msra.gmra.mrb[16].mxu0 %v6949_v36  ;;  %3184 = vmatpush1.bf16.msra.mxu1 %v6070_v35  ;;  %v6244_v35 = vld [vmem:[#allocation7 + $0x60] ss:$24 sps:$4 sm:$0xff]  }
 0x251   :  { %3215 = vmatprep.mubr.bf16.mxu1 %v6909_v40  ;;  %3185 = vmatprep.subr.bf16.mxu1 %v6075_v39  ;;  %v6088_v40 = vld [vmem:[#allocation4 + $0x130] ss:$24 sps:$4 sm:$0xff]  }
 0x252   :  { %4256 = vmatpush1.bf16.msra.mxu0 %v6238_v26  ;;  %v6249_v39 = vld [vmem:[#allocation7 + $0x94] ss:$24 sps:$4 sm:$0xff]  }
 0x253   :  { %4257 = vmatprep.subr.bf16.mxu0 %v6243_v29  ;;  %v6198_v26 = vld [vmem:[#allocation4 + $0x7f4] ss:$24 sps:$4 sm:$0xff]   ;;  %v6199_v29 = vld [vmem:[#allocation4 + $0x820] ss:$24 sps:$4 sm:$0xff]  }
 0x254   :  { %3186 = vmatpush1.bf16.msra.mxu1 %v6073_v42  ;;  %v6151_v42 = vld [vmem:[#allocation4 + $0x520] ss:$24 sps:$4 sm:$0xff]  }
 0x255   :  { %3187 = vmatprep.subr.bf16.mxu1 %v6078_v43  ;;  %v6156_v43 = vld [vmem:[#allocation4 + $0x554] ss:$24 sps:$4 sm:$0xff]  }
 0x256   :  { %4258 = vmatpush1.bf16.msra.mxu0 %v6241_v31  ;;  %v6202_v31 = vld [vmem:[#allocation4 + $0x850] ss:$24 sps:$4 sm:$0xff]  }
 0x257   :  { %4259 = vmatprep.subr.bf16.mxu0 %v6246_v32  ;;  %v6207_v32 = vld [vmem:[#allocation4 + $0x884] ss:$24 sps:$4 sm:$0xff]  }
 0x258   :  { %3188 = vmatpush1.bf16.msra.mxu1 %v6076_v45  ;;  %v6247_v45 = vld [vmem:[#allocation7 + $0x90] ss:$24 sps:$4 sm:$0xff]  }
 0x259   :  { %3189 = vmatprep.subr.bf16.mxu1 %v6081_v46  ;;  %v6252_v46 = vld [vmem:[#allocation7 + $0xc4] ss:$24 sps:$4 sm:$0xff]  }
 0x25a   :  { %4260 = vmatpush1.bf16.msra.mxu0 %v6244_v35  ;;  %v6208_v35 = vld [vmem:[#allocation4 + $0x8b0] ss:$24 sps:$4 sm:$0xff]  }
 0x25b   :  { %4261 = vmatprep.subr.bf16.mxu0 %v6249_v39  ;;  %v6213_v39 = vld [vmem:[#allocation4 + $0x8e4] ss:$24 sps:$4 sm:$0xff]  }
 0x25c   :  { %3190 = vmatpush1.bf16.msra.mxu1 %v6079_v5  ;;  %v6154_v5 = vld [vmem:[#allocation4 + $0x550] ss:$24 sps:$4 sm:$0xff]  }
 0x25d   :  { %3191 = vmatprep.subr.bf16.mxu1 %v6084_v47  ;;  %v6159_v47 = vld [vmem:[#allocation4 + $0x584] ss:$24 sps:$4 sm:$0xff]  }
 0x25e   :  { %4262 = vmatpush1.bf16.msra.mxu0 %v6247_v45  ;;  %v6214_v45 = vld [vmem:[#allocation4 + $0x910] ss:$24 sps:$4 sm:$0xff]  }
 0x25f   :  { %4263 = vmatprep.subr.bf16.mxu0 %v6252_v46  ;;  %v6219_v46 = vld [vmem:[#allocation4 + $0x944] ss:$24 sps:$4 sm:$0xff]  }
 0x260   :  { %3192 = vmatpush1.bf16.msra.mxu1 %v6082_v48  ;;  %v6250_v48 = vld [vmem:[#allocation7 + $0xc0] ss:$24 sps:$4 sm:$0xff]  }
 0x261   :  { %3193 = vmatprep.subr.bf16.mxu1 %v6087_v49  ;;  %v6255_v49 = vld [vmem:[#allocation7 + $0xf4] ss:$24 sps:$4 sm:$0xff]  }
 0x262   :  { %4264 = vmatpush1.bf16.msra.mxu0 %v6250_v48  ;;  %v1145_v48 = vlaneseq }
 0x263   :  { %4265 = vmatprep.subr.bf16.mxu0 %v6255_v49  ;;  %v6220_v49 = vld [vmem:[#allocation4 + $0x970] ss:$24 sps:$4 sm:$0xff]  }
 0x264   :  { %3194 = vmatpush1.bf16.msra.mxu1 %v6085_v50  ;;  %v6157_v50 = vld [vmem:[#allocation4 + $0x580] ss:$24 sps:$4 sm:$0xff]  }
 0x265   :  { %3195 = vmatprep.subr.bf16.mxu1 %v6090_v51  ;;  %v6162_v51 = vld [vmem:[#allocation4 + $0x5b4] ss:$24 sps:$4 sm:$0xff]  }
 0x268   :  { %3196 = vmatpush1.bf16.msra.mxu1 %v6088_v40  ;;  %v6253_v40 = vld [vmem:[#allocation7 + $0xf0] ss:$24 sps:$4 sm:$0xff]  }
 0x269   :  { %3197 = vmatprep.subr.bf16.mxu1 %v6093_v52  ;;  %v6258_v52 = vld [vmem:[#allocation7 + $0x124] ss:$24 sps:$4 sm:$0xff]   ;;  %4266 = vmatpush1.bf16.msra.mxu0 %v6253_v40 }
 0x26a   :  { %4267 = vmatprep.subr.bf16.mxu0 %v6258_v52  ;;  %v6223_v40 = vld [vmem:[#allocation4 + $0x9a0] ss:$24 sps:$4 sm:$0xff]   ;;  %v6228_v52 = vld [vmem:[#allocation4 + $0x9d4] ss:$24 sps:$4 sm:$0xff]  }
 0x26c   :  { %3198 = vmatpush1.bf16.msra.mxu1 %v6091_v53  ;;  %v6160_v53 = vld [vmem:[#allocation4 + $0x5b0] ss:$24 sps:$4 sm:$0xff]  }
 0x26d   :  { %3199 = vmatprep.subr.bf16.mxu1 %v6096_v54  ;;  %v6165_v54 = vld [vmem:[#allocation4 + $0x5e4] ss:$24 sps:$4 sm:$0xff]  }
 0x270   :  { %3200 = vmatpush1.bf16.msra.mxu1 %v6094_v55  ;;  %v6256_v55 = vld [vmem:[#allocation7 + $0x120] ss:$24 sps:$4 sm:$0xff]  }
 0x271   :  { %3201 = vmatprep.subr.bf16.mxu1 %v6099_v56  ;;  %v6261_v56 = vld [vmem:[#allocation7 + $0x154] ss:$24 sps:$4 sm:$0xff]   ;;  %4268 = vmatpush1.bf16.msra.mxu0 %v6256_v55 }
 0x272   :  { %4269 = vmatprep.subr.bf16.mxu0 %v6261_v56  ;;  %v6231_v56 = vld [vmem:[#allocation4 + $0xa04] ss:$24 sps:$4 sm:$0xff]  }
 0x274   :  { %3202 = vmatpush1.bf16.msra.mxu1 %v6097_v57  ;;  %v6163_v57 = vld [vmem:[#allocation4 + $0x5e0] ss:$24 sps:$4 sm:$0xff]  }
 0x275   :  { %3203 = vmatprep.subr.bf16.mxu1 %v6102_v59  ;;  %v6168_v59 = vld [vmem:[#allocation4 + $0x614] ss:$24 sps:$4 sm:$0xff]  }
 0x278   :  { %3204 = vmatpush1.bf16.msra.mxu1 %v6100_v61  ;;  %v6259_v61 = vld [vmem:[#allocation7 + $0x150] ss:$24 sps:$4 sm:$0xff]  }
 0x279   :  { %3205 = vmatprep.subr.bf16.mxu1 %v6105_v62  ;;  %v6264_v62 = vld [vmem:[#allocation7 + $0x184] ss:$24 sps:$4 sm:$0xff]   ;;  %4270 = vmatpush1.bf16.msra.mxu0 %v6259_v61 }
 0x27a   :  { %4271 = vmatprep.subr.bf16.mxu0 %v6264_v62  ;;  %v6234_v62 = vld [vmem:[#allocation4 + $0xa34] ss:$24 sps:$4 sm:$0xff]  }
 0x27c   :  { %3206 = vmatpush1.bf16.msra.mxu1 %v6103_v63  ;;  %v6166_v63 = vld [vmem:[#allocation4 + $0x610] ss:$24 sps:$4 sm:$0xff]  }
 0x27d   :  { %3207 = vmatprep.subr.bf16.mxu1 %v6108_v37  ;;  %v6171_v37 = vld [vmem:[#allocation4 + $0x644] ss:$24 sps:$4 sm:$0xff]  }
 0x280   :  { %3208 = vmatpush1.bf16.msra.mxu1 %v6106_v2  ;;  %v6262_v2 = vld [vmem:[#allocation7 + $0x180] ss:$24 sps:$4 sm:$0xff]  }
 0x281   :  { %3209 = vmatprep.subr.bf16.mxu1 %v6111_v3  ;;  %v6267_v3 = vld [vmem:[#allocation7 + $0x1b4] ss:$24 sps:$4 sm:$0xff]   ;;  %4272 = vmatpush1.bf16.msra.mxu0 %v6262_v2 }
 0x282   :  { %4273 = vmatprep.subr.bf16.mxu0 %v6267_v3 }
 0x284   :  { %3210 = vmatpush1.bf16.msra.mxu1 %v6109_v1  ;;  %v6169_v1 = vld [vmem:[#allocation4 + $0x640] ss:$24 sps:$4 sm:$0xff]  }
 0x285   :  { %3211 = vmatprep.subr.bf16.mxu1 %v6114_v6  ;;  %v6174_v6 = vld [vmem:[#allocation4 + $0x674] ss:$24 sps:$4 sm:$0xff]  }
 0x288   :  { %3212 = vmatpush1.bf16.msra.mxu1 %v6112_v7  ;;  %v6265_v7 = vld [vmem:[#allocation7 + $0x1b0] ss:$24 sps:$4 sm:$0xff]  }
 0x289   :  { %3213 = vmatprep.subr.bf16.mxu1 %v6117_v9  ;;  %v6270_v9 = vld [vmem:[#allocation7 + $0x1e4] ss:$24 sps:$4 sm:$0xff]   ;;  %4274 = vmatpush1.bf16.msra.mxu0 %v6265_v7 }
 0x28a   :  { %4275 = vmatprep.subr.bf16.mxu0 %v6270_v9  ;;  %v6232_v7 = vld [vmem:[#allocation4 + $0xa30] ss:$24 sps:$4 sm:$0xff]  }
 0x28c   :  { %3214 = vmatpush1.bf16.msra.mxu1 %v6115_v8  ;;  %v6172_v8 = vld [vmem:[#allocation4 + $0x670] ss:$24 sps:$4 sm:$0xff]  }
 0x28d   :  { %3224 = vmatprep.subr.bf16.mxu1 %v6120_v10  ;;  %v6177_v10 = vld [vmem:[#allocation4 + $0x6a4] ss:$24 sps:$4 sm:$0xff]  }
 0x28f   :  { %3216 = vmatmul.mubr.bf16.vlgmr.msra.gmra.mrb[16].mxu1 %v6911_v41  ;;  %v6133_v41 = vld [vmem:[#allocation4 + $0x400] ss:$24 sps:$4 sm:$0xff]  }
 0x290   :  { %3225 = vmatpush1.bf16.msra.mxu1 %v6118_v11  ;;  %3256 = vmatprep.mubr.bf16.mxu1 %v6915_v44  ;;  %v6136_v44 = vld [vmem:[#allocation4 + $0x430] ss:$24 sps:$4 sm:$0xff]  }
 0x291   :  { %3226 = vmatprep.subr.bf16.mxu1 %v6123_v12  ;;  %v6268_v11 = vld [vmem:[#allocation7 + $0x1e0] ss:$24 sps:$4 sm:$0xff]  }
 0x292   :  { %v6175_v12 = vld [vmem:[#allocation4 + $0x6a0] ss:$24 sps:$4 sm:$0xff]   ;;  %4276 = vmatpush1.bf16.msra.mxu0 %v6268_v11 }
 0x294   :  { %3227 = vmatpush1.bf16.msra.mxu1 %v6121_v38  ;;  %v6180_v38 = vld [vmem:[#allocation4 + $0x6d4] ss:$24 sps:$4 sm:$0xff]  }
 0x295   :  { %3228 = vmatprep.subr.bf16.mxu1 %v6126_v13  ;;  %v6276_v13 = vld [vmem:[#allocation7 + $0x244] ss:$24 sps:$4 sm:$0xff]  }
 0x298   :  { %3229 = vmatpush1.bf16.msra.mxu1 %v6124_v14  ;;  %v6178_v14 = vld [vmem:[#allocation4 + $0x6d0] ss:$24 sps:$4 sm:$0xff]  }
 0x299   :  { %3230 = vmatprep.subr.bf16.mxu1 %v6129_v15  ;;  %v6183_v15 = vld [vmem:[#allocation4 + $0x704] ss:$24 sps:$4 sm:$0xff]  }
 0x29c   :  { %3231 = vmatpush1.bf16.msra.mxu1 %v6127_v16  ;;  %v6274_v16 = vld [vmem:[#allocation7 + $0x240] ss:$24 sps:$4 sm:$0xff]  }
 0x29d   :  { %3232 = vmatprep.subr.bf16.mxu1 %v6132_v17  ;;  %v6279_v17 = vld [vmem:[#allocation7 + $0x274] ss:$24 sps:$4 sm:$0xff]  }
 0x2a0   :  { %3233 = vmatpush1.bf16.msra.mxu1 %v6130_v18  ;;  %v6181_v18 = vld [vmem:[#allocation4 + $0x700] ss:$24 sps:$4 sm:$0xff]  }
 0x2a1   :  { %3234 = vmatprep.subr.bf16.mxu1 %v6135_v19  ;;  %v6186_v19 = vld [vmem:[#allocation4 + $0x734] ss:$24 sps:$4 sm:$0xff]  }
 0x2a4   :  { %3235 = vmatpush1.bf16.msra.mxu1 %v6133_v41  ;;  %v6277_v41 = vld [vmem:[#allocation7 + $0x270] ss:$24 sps:$4 sm:$0xff]  }
 0x2a5   :  { %3236 = vmatprep.subr.bf16.mxu1 %v6138_v20  ;;  %v6184_v20 = vld [vmem:[#allocation4 + $0x730] ss:$24 sps:$4 sm:$0xff]  }
 0x2a8   :  { %3237 = vmatpush1.bf16.msra.mxu1 %v6136_v44  ;;  %v6189_v44 = vld [vmem:[#allocation4 + $0x764] ss:$24 sps:$4 sm:$0xff]  }
 0x2a9   :  { %3238 = vmatprep.subr.bf16.mxu1 %v6141_v21  ;;  %v6187_v21 = vld [vmem:[#allocation4 + $0x760] ss:$24 sps:$4 sm:$0xff]  }
 0x2ac   :  { %3239 = vmatpush1.bf16.msra.mxu1 %v6139_v22  ;;  %v6192_v22 = vld [vmem:[#allocation4 + $0x794] ss:$24 sps:$4 sm:$0xff]  }
 0x2ad   :  { %3240 = vmatprep.subr.bf16.mxu1 %v6144_v23  ;;  %v6190_v23 = vld [vmem:[#allocation4 + $0x790] ss:$24 sps:$4 sm:$0xff]  }
 0x2b0   :  { %3241 = vmatpush1.bf16.msra.mxu1 %v6142_v24  ;;  %v6195_v24 = vld [vmem:[#allocation4 + $0x7c4] ss:$24 sps:$4 sm:$0xff]  }
 0x2b1   :  { %3242 = vmatprep.subr.bf16.mxu1 %v6147_v25  ;;  %v6193_v25 = vld [vmem:[#allocation4 + $0x7c0] ss:$24 sps:$4 sm:$0xff]  }
 0x2b4   :  { %3243 = vmatpush1.bf16.msra.mxu1 %v6145_v28  ;;  %v6201_v28 = vld [vmem:[#allocation4 + $0x824] ss:$24 sps:$4 sm:$0xff]  }
 0x2b5   :  { %3244 = vmatprep.subr.bf16.mxu1 %v6150_v30  ;;  %v6204_v30 = vld [vmem:[#allocation4 + $0x854] ss:$24 sps:$4 sm:$0xff]  }
 0x2b8   :  { %3245 = vmatpush1.bf16.msra.mxu1 %v6148_v33  ;;  %v6205_v33 = vld [vmem:[#allocation4 + $0x880] ss:$24 sps:$4 sm:$0xff]  }
 0x2b9   :  { %3246 = vmatprep.subr.bf16.mxu1 %v6153_v34  ;;  %v6210_v34 = vld [vmem:[#allocation4 + $0x8b4] ss:$24 sps:$4 sm:$0xff]  }
 0x2bc   :  { %3247 = vmatpush1.bf16.msra.mxu1 %v6151_v42  ;;  %v6211_v42 = vld [vmem:[#allocation4 + $0x8e0] ss:$24 sps:$4 sm:$0xff]  }
 0x2bd   :  { %3248 = vmatprep.subr.bf16.mxu1 %v6156_v43  ;;  %v6216_v43 = vld [vmem:[#allocation4 + $0x914] ss:$24 sps:$4 sm:$0xff]  }
 0x2c0   :  { %3249 = vmatpush1.bf16.msra.mxu1 %v6154_v5  ;;  %v6217_v5 = vld [vmem:[#allocation4 + $0x940] ss:$24 sps:$4 sm:$0xff]  }
 0x2c1   :  { %3250 = vmatprep.subr.bf16.mxu1 %v6159_v47  ;;  %v6222_v47 = vld [vmem:[#allocation4 + $0x974] ss:$24 sps:$4 sm:$0xff]  }
 0x2c4   :  { %3251 = vmatpush1.bf16.msra.mxu1 %v6157_v50  ;;  %v6225_v50 = vld [vmem:[#allocation4 + $0x9a4] ss:$24 sps:$4 sm:$0xff]  }
 0x2c5   :  { %3252 = vmatprep.subr.bf16.mxu1 %v6162_v51  ;;  %v6960_v51 = vshrl.u32 %v1145_v48, 7  ;;  %v6294_v48 = vld [vmem:[#allocation7 + $0x364] ss:$24 sps:$4 sm:$0xff]  }
 0x2c7   :  { %v1159_v55 = vsub.s32 3, %v6960_v51 }
 0x2c8   :  { %3253 = vmatpush1.bf16.msra.mxu1 %v6160_v53  ;;  %v1147_v53 = vsub.s32 0, %v6960_v51 }
 0x2c9   :  { %3254 = vmatprep.subr.bf16.mxu1 %v6165_v54  ;;  %v1143_v54 = vld [vmem:[#allocation6] sm:$0x3f] }
 0x2ca   :  { %v1160_v61 = vrot.slane %v1143_v54, %v1159_v55 }
 0x2cc   :  { %3255 = vmatpush1.bf16.msra.mxu1 %v6163_v57  ;;  %v1148_v57 = vrot.slane %v1143_v54, %v1147_v53 }
 0x2cd   :  { %3265 = vmatprep.subr.bf16.mxu1 %v6168_v59  ;;  %v6229_v59 = vld [vmem:[#allocation4 + $0xa00] ss:$24 sps:$4 sm:$0xff]  }
 0x2cf   :  { %3257 = vmatmul.mubr.bf16.vlgmr.msra.gmra.mrb[16].mxu1 %v6929_v58  ;;  %v6273_v58 = vld [vmem:[#allocation7 + $0x214] ss:$24 sps:$4 sm:$0xff]  }
 0x2d0   :  { %3266 = vmatpush1.bf16.msra.mxu1 %v6166_v63  ;;  %3297 = vmatprep.mubr.bf16.mxu1 %v6933_v60  ;;  %v6271_v60 = vld [vmem:[#allocation7 + $0x210] ss:$24 sps:$4 sm:$0xff]  }
 0x2d1   :  { %3267 = vmatprep.subr.bf16.mxu1 %v6171_v37  ;;  %4277 = vmatprep.subr.bf16.mxu0 %v6273_v58  ;;  %v6237_v58 = vld [vmem:[#allocation4 + $0xa64] ss:$24 sps:$4 sm:$0xff]  }
 0x2d2   :  { %4278 = vmatpush1.bf16.msra.mxu0 %v6271_v60  ;;  %v6235_v60 = vld [vmem:[#allocation4 + $0xa60] ss:$24 sps:$4 sm:$0xff]  }
 0x2d3   :  { %4279 = vmatprep.subr.bf16.mxu0 %v6276_v13 }
 0x2d4   :  { %3268 = vmatpush1.bf16.msra.mxu1 %v6169_v1 }
 0x2d5   :  { %3269 = vmatprep.subr.bf16.mxu1 %v6174_v6 }
 0x2d6   :  { %4280 = vmatpush1.bf16.msra.mxu0 %v6274_v16  ;;  %v6285_v16 = vld [vmem:[#allocation7 + $0x2d4] ss:$24 sps:$4 sm:$0xff]  }
 0x2d7   :  { %4281 = vmatprep.subr.bf16.mxu0 %v6279_v17  ;;  %v6283_v17 = vld [vmem:[#allocation7 + $0x2d0] ss:$24 sps:$4 sm:$0xff]  }
 0x2d8   :  { %3270 = vmatpush1.bf16.msra.mxu1 %v6172_v8 }
 0x2d9   :  { %3271 = vmatprep.subr.bf16.mxu1 %v6177_v10 }
 0x2da   :  { %4282 = vmatpush1.bf16.msra.mxu0 %v6277_v41  ;;  %v1155_v41 = vsub.s32 2, %v6960_v51 }
 0x2dc   :  { %3272 = vmatpush1.bf16.msra.mxu1 %v6175_v12 }
 0x2dd   :  { %3273 = vmatprep.subr.bf16.mxu1 %v6180_v38 }
 0x2e0   :  { %3274 = vmatpush1.bf16.msra.mxu1 %v6178_v14  ;;  %v6282_v14 = vld [vmem:[#allocation7 + $0x2a4] ss:$24 sps:$4 sm:$0xff]  }
 0x2e1   :  { %3275 = vmatprep.subr.bf16.mxu1 %v6183_v15  ;;  %v6280_v15 = vld [vmem:[#allocation7 + $0x2a0] ss:$24 sps:$4 sm:$0xff]   ;;  %4283 = vmatprep.subr.bf16.mxu0 %v6282_v14 }
 0x2e2   :  { %4284 = vmatpush1.bf16.msra.mxu0 %v6280_v15  ;;  %v6331_v14 = vld [vmem:[#allocation7 + $0x158] ss:$24 sps:$4 sm:$0xff]   ;;  %v6336_v15 = vld [vmem:[#allocation7 + $0x18c] ss:$24 sps:$4 sm:$0xff]  }
 0x2e3   :  { %4285 = vmatprep.subr.bf16.mxu0 %v6285_v16  ;;  %v6334_v16 = vld [vmem:[#allocation7 + $0x188] ss:$24 sps:$4 sm:$0xff]  }
 0x2e4   :  { %3276 = vmatpush1.bf16.msra.mxu1 %v6181_v18  ;;  %v6288_v18 = vld [vmem:[#allocation7 + $0x304] ss:$24 sps:$4 sm:$0xff]  }
 0x2e5   :  { %3277 = vmatprep.subr.bf16.mxu1 %v6186_v19  ;;  %v1151_v19 = vsub.s32 1, %v6960_v51 }
 0x2e6   :  { %4286 = vmatpush1.bf16.msra.mxu0 %v6283_v17  ;;  %v6339_v17 = vld [vmem:[#allocation7 + $0x1bc] ss:$24 sps:$4 sm:$0xff]  }
 0x2e7   :  { %4296 = vmatprep.subr.bf16.mxu0 %v6288_v18  ;;  %v6337_v18 = vld [vmem:[#allocation7 + $0x1b8] ss:$24 sps:$4 sm:$0xff]  }
 0x2e8   :  { %3278 = vmatpush1.bf16.msra.mxu1 %v6184_v20  ;;  %v1163_v20 = vsub.s32 4, %v6960_v51 }
 0x2e9   :  { %3279 = vmatprep.subr.bf16.mxu1 %v6189_v44  ;;  %v1167_v44 = vsub.s32 5, %v6960_v51  ;;  %v6471_v51 = vld [vmem:[#allocation10 + $0x88] sm:$0xff]  }
 0x2ec   :  { %3280 = vmatpush1.bf16.msra.mxu1 %v6187_v21  ;;  %v1156_v21 = vrot.slane %v1143_v54, %v1155_v41 }
 0x2ed   :  { %3281 = vmatprep.subr.bf16.mxu1 %v6192_v22  ;;  %v1164_v22 = vrot.slane %v1143_v54, %v1163_v20 }
 0x2f0   :  { %3282 = vmatpush1.bf16.msra.mxu1 %v6190_v23  ;;  %v1168_v23 = vrot.slane %v1143_v54, %v1167_v44 }
 0x2f1   :  { %3283 = vmatprep.subr.bf16.mxu1 %v6195_v24 }
 0x2f4   :  { %3284 = vmatpush1.bf16.msra.mxu1 %v6193_v25 }
 0x2f5   :  { %3285 = vmatprep.subr.bf16.mxu1 %v6198_v26 }
 0x2f8   :  { %3286 = vmatpush1.bf16.msra.mxu1 %v6196_v27 }
 0x2f9   :  { %3287 = vmatprep.subr.bf16.mxu1 %v6201_v28 }
 0x2fc   :  { %3288 = vmatpush1.bf16.msra.mxu1 %v6199_v29 }
 0x2fd   :  { %3289 = vmatprep.subr.bf16.mxu1 %v6204_v30 }
 0x300   :  { %3290 = vmatpush1.bf16.msra.mxu1 %v6202_v31 }
 0x301   :  { %3291 = vmatprep.subr.bf16.mxu1 %v6207_v32 }
 0x304   :  { %3292 = vmatpush1.bf16.msra.mxu1 %v6205_v33 }
 0x305   :  { %3293 = vmatprep.subr.bf16.mxu1 %v6210_v34 }
 0x308   :  { %3294 = vmatpush1.bf16.msra.mxu1 %v6208_v35 }
 0x309   :  { %3295 = vmatprep.subr.bf16.mxu1 %v6213_v39 }
 0x30c   :  { %3296 = vmatpush1.bf16.msra.mxu1 %v6211_v42 }
 0x30d   :  { %3306 = vmatprep.subr.bf16.mxu1 %v6216_v43 }
 0x30f   :  { %3298 = vmatmul.mubr.bf16.vlgmr.msra.gmra.mrb[16].mxu1 %v6941_v4  ;;  %v6226_v4 = vld [vmem:[#allocation4 + $0x9d0] ss:$24 sps:$4 sm:$0xff]  }
 0x310   :  { %3307 = vmatpush1.bf16.msra.mxu1 %v6214_v45  ;;  %3338 = vmatprep.mubr.bf16.mxu1 %v6709_v0  ;;  %v6286_v45 = vld [vmem:[#allocation7 + $0x300] ss:$24 sps:$4 sm:$0xff]  }
 0x311   :  { %3308 = vmatprep.subr.bf16.mxu1 %v6219_v46 }
 0x314   :  { %3309 = vmatpush1.bf16.msra.mxu1 %v6217_v5  ;;  %v6291_v5 = vld [vmem:[#allocation7 + $0x334] ss:$24 sps:$4 sm:$0xff]  }
 0x315   :  { %3310 = vmatprep.subr.bf16.mxu1 %v6222_v47  ;;  %v6289_v47 = vld [vmem:[#allocation7 + $0x330] ss:$24 sps:$4 sm:$0xff]  }
 0x318   :  { %3311 = vmatpush1.bf16.msra.mxu1 %v6220_v49  ;;  %v6292_v49 = vld [vmem:[#allocation7 + $0x360] ss:$24 sps:$4 sm:$0xff]  }
 0x319   :  { %3312 = vmatprep.subr.bf16.mxu1 %v6225_v50  ;;  %v6297_v50 = vld [vmem:[#allocation7 + $0x394] ss:$24 sps:$4 sm:$0xff]  }
 0x31c   :  { %3313 = vmatpush1.bf16.msra.mxu1 %v6223_v40  ;;  %v6295_v40 = vld [vmem:[#allocation7 + $0x390] ss:$24 sps:$4 sm:$0xff]  }
 0x31d   :  { %3314 = vmatprep.subr.bf16.mxu1 %v6228_v52  ;;  %v6300_v52 = vld [vmem:[#allocation7 + $0x3c4] ss:$24 sps:$4 sm:$0xff]  }
 0x320   :  { %3315 = vmatpush1.bf16.msra.mxu1 %v6226_v4  ;;  %v6298_v4 = vld [vmem:[#allocation7 + $0x3c0] ss:$24 sps:$4 sm:$0xff]  }
 0x321   :  { %3316 = vmatprep.subr.bf16.mxu1 %v6231_v56  ;;  %v6301_v56 = vld [vmem:[#allocation7 + $0x3f0] ss:$24 sps:$4 sm:$0xff]  }
 0x322   :  { %v3012_v63 = vpop.f32.mrb[12].mxu1 }
 0x323   :  { %v5572_v37 = vadd.f32 %v3012_v63, %v1148_v57  ;;  %v3176_v2 = vpop.f32.mrb[16].mxu0  ;;  %v3014_v3 = vpop.f32.mrb[13].mxu1  ;;  %v6306_v57 = vld [vmem:[#allocation7 + $0x424] ss:$24 sps:$4 sm:$0xff]  }
 0x324   :  { %v3178_v1 = vpop.f32.mrb[17].mxu0  ;;  %v3016_v6 = vpop.f32.mrb[14].mxu1  ;;  %3317 = vmatpush1.bf16.msra.mxu1 %v6229_v59  ;;  %v5574_v25 = vadd.f32 %v3176_v2, %v1156_v21  ;;  %v6304_v59 = vld [vmem:[#allocation7 + $0x420] ss:$24 sps:$4 sm:$0xff]   ;;  %v6312_v63 = vld [vmem:[#allocation7 + $0xc] ss:$24 sps:$4 sm:$0xff]  }
 0x325   :  { %v3347_v9 = vmax.f32 %v5572_v37, 0.0  ;;  %v5575_v8 = vadd.f32 %v3178_v1, %v1160_v61  ;;  %v3180_v10 = vpop.f32.mrb[18].mxu0  ;;  %v3017_v11 = vpop.f32.mrb[15].mxu1  ;;  %3318 = vmatprep.subr.bf16.mxu1 %v6234_v62  ;;  %v6309_v61 = vld [vmem:[#allocation7 + $0x454] ss:$24 sps:$4 sm:$0xff]  }
 0x326   :  { %v3181_v12 = vpop.f32.mrb[19].mxu0  ;;  %v3349_v34 = vmax.f32 %v5574_v25, 0.0  ;;  %v6307_v62 = vld [vmem:[#allocation7 + $0x450] ss:$24 sps:$4 sm:$0xff]   ;;  %v6318_v6 = vld [vmem:[#allocation7 + $0x6c] ss:$24 sps:$4 sm:$0xff]  }
 0x327   :  { %v3350_v38 = vmax.f32 %v5575_v8, 0.0  ;;  %v6310_v37 = vld [vmem:[#allocation7 + $0x8] ss:$24 sps:$4 sm:$0xff]   ;;  %v6313_v1 = vld [vmem:[#allocation7 + $0x38] ss:$24 sps:$4 sm:$0xff]  }
 0x328   :  { %3319 = vmatpush1.bf16.msra.mxu1 %v6232_v7  ;;  %v6316_v7 = vld [vmem:[#allocation7 + $0x68] ss:$24 sps:$4 sm:$0xff]   ;;  %v6319_v8 = vld [vmem:[#allocation7 + $0x98] ss:$24 sps:$4 sm:$0xff]   ;;  %v6324_v10 = vld [vmem:[#allocation7 + $0xcc] ss:$24 sps:$4 sm:$0xff]  }
 0x329   :  { %v3353_v13 = vmax.f32 %v3347_v9, %v3350_v38  ;;  %3320 = vmatprep.subr.bf16.mxu1 %v6237_v58  ;;  %v6321_v9 = vld [vmem:[#allocation7 + $0x9c] ss:$24 sps:$4 sm:$0xff]   ;;  %v6322_v11 = vld [vmem:[#allocation7 + $0xc8] ss:$24 sps:$4 sm:$0xff]   ;;  %v6325_v12 = vld [vmem:[#allocation7 + $0xf8] ss:$24 sps:$4 sm:$0xff]  }
 0x32a   :  { %v6327_v58 = vld [vmem:[#allocation7 + $0xfc] ss:$24 sps:$4 sm:$0xff]   ;;  %v6330_v38 = vld [vmem:[#allocation7 + $0x12c] ss:$24 sps:$4 sm:$0xff]   ;;  %v6340_v21 = vld [vmem:[#allocation7 + $0x1e8] ss:$24 sps:$4 sm:$0xff]  }
 0x32b   :  { %v6983_v46 = vpack.c.bf16 %v3353_v13, %v3353_v13  ;;  %v6333_v13 = vld [vmem:[#allocation7 + $0x15c] ss:$24 sps:$4 sm:$0xff]   ;;  %v6346_v25 = vld [vmem:[#allocation7 + $0x248] ss:$24 sps:$4 sm:$0xff]  }
 0x32c   :  { %3321 = vmatpush1.bf16.msra.mxu1 %v6235_v60  ;;  %v6328_v60 = vld [vmem:[#allocation7 + $0x128] ss:$24 sps:$4 sm:$0xff]  }
 0x32f   :  { %3339 = vmatmul.mubr.bf16.vlgmr.msra.gmra.mrb[16].mxu1 %v6949_v36  ;;  %v1152_v36 = vrot.slane %v1143_v54, %v1151_v19  ;;  %v6303_v54 = vld [vmem:[#allocation7 + $0x3f4] ss:$24 sps:$4 sm:$0xff]  }
 0x331   :  { %v5573_v24 = vadd.f32 %v3014_v3, %v1152_v36  ;;  %v6315_v3 = vld [vmem:[#allocation7 + $0x3c] ss:$24 sps:$4 sm:$0xff]   ;;  %v6342_v36 = vld [vmem:[#allocation7 + $0x1ec] ss:$24 sps:$4 sm:$0xff]  }
 0x333   :  { %v3348_v31 = vmax.f32 %v5573_v24, 0.0  ;;  %v6348_v24 = vld [vmem:[#allocation7 + $0x24c] ss:$24 sps:$4 sm:$0xff]  }
 0x402   :  { %v3340_v26 = vpop.f32.mrb[16].mxu1 }
 0x403   :  { %v5576_v27 = vadd.f32 %v3340_v26, %v1164_v22  ;;  %v3342_v28 = vpop.f32.mrb[17].mxu1  ;;  %v6345_v22 = vld [vmem:[#allocation7 + $0x21c] ss:$24 sps:$4 sm:$0xff]  }
 0x404   :  { %v5577_v29 = vadd.f32 %v3342_v28, %v1168_v23  ;;  %v3344_v30 = vpop.f32.mrb[18].mxu1  ;;  %v6343_v23 = vld [vmem:[#allocation7 + $0x218] ss:$24 sps:$4 sm:$0xff]   ;;  %v6351_v26 = vld [vmem:[#allocation7 + $0x27c] ss:$24 sps:$4 sm:$0xff]  }
 0x405   :  { %v3351_v32 = vmax.f32 %v5576_v27, 0.0  ;;  %v3345_v33 = vpop.f32.mrb[19].mxu1  ;;  %v6349_v27 = vld [vmem:[#allocation7 + $0x278] ss:$24 sps:$4 sm:$0xff]   ;;  %v6354_v28 = vld [vmem:[#allocation7 + $0x2ac] ss:$24 sps:$4 sm:$0xff]  }
 0x406   :  { %v3352_v35 = vmax.f32 %v5577_v29, 0.0  ;;  %v6352_v29 = vld [vmem:[#allocation7 + $0x2a8] ss:$24 sps:$4 sm:$0xff]   ;;  %v6357_v30 = vld [vmem:[#allocation7 + $0x2dc] ss:$24 sps:$4 sm:$0xff]  }
 0x407   :  { %v3354_v39 = vmax.f32 %v3348_v31, %v3351_v32  ;;  %v6355_v31 = vld [vmem:[#allocation7 + $0x2d8] ss:$24 sps:$4 sm:$0xff]   ;;  %v6360_v32 = vld [vmem:[#allocation7 + $0x30c] ss:$24 sps:$4 sm:$0xff]   ;;  %v6358_v33 = vld [vmem:[#allocation7 + $0x308] ss:$24 sps:$4 sm:$0xff]  }
 0x408   :  { %v3355_v42 = vmax.f32 %v3349_v34, %v3352_v35  ;;  %v6363_v34 = vld [vmem:[#allocation7 + $0x33c] ss:$24 sps:$4 sm:$0xff]   ;;  %v6361_v35 = vld [vmem:[#allocation7 + $0x338] ss:$24 sps:$4 sm:$0xff]  }
 0x409   :  { %v6981_v43 = vpack.c.bf16 %v3354_v39, %v3354_v39  ;;  %v6366_v39 = vld [vmem:[#allocation7 + $0x36c] ss:$24 sps:$4 sm:$0xff]  }
 0x40a   :  { %v6988_v2 = vpack.c.bf16 %v3355_v42, %v3355_v42  ;;  %v6364_v42 = vld [vmem:[#allocation7 + $0x368] ss:$24 sps:$4 sm:$0xff]  }
 0x40b   :  { %4287 = vmatprep.mubr.bf16.mxu0 %v6981_v43 }
 0x40c   :  { %4288 = vmatmul.mubr.bf16.vlgmr.msra.gmra.mrb[20].mxu0 %v6983_v46 }
 0x40d   :  { %4297 = vmatpush1.bf16.msra.mxu0 %v6286_v45  ;;  %4328 = vmatprep.mubr.bf16.mxu0 %v6709_v0  ;;  %v6369_v45 = vld [vmem:[#allocation7 + $0x39c] ss:$24 sps:$4 sm:$0xff]  }
 0x40e   :  { %4298 = vmatprep.subr.bf16.mxu0 %v6291_v5  ;;  %v6367_v5 = vld [vmem:[#allocation7 + $0x398] ss:$24 sps:$4 sm:$0xff]  }
 0x411   :  { %4299 = vmatpush1.bf16.msra.mxu0 %v6289_v47  ;;  %v6372_v47 = vld [vmem:[#allocation7 + $0x3cc] ss:$24 sps:$4 sm:$0xff]  }
 0x412   :  { %4300 = vmatprep.subr.bf16.mxu0 %v6294_v48  ;;  %v6370_v48 = vld [vmem:[#allocation7 + $0x3c8] ss:$24 sps:$4 sm:$0xff]  }
 0x415   :  { %4301 = vmatpush1.bf16.msra.mxu0 %v6292_v49  ;;  %v6375_v49 = vld [vmem:[#allocation7 + $0x3fc] ss:$24 sps:$4 sm:$0xff]  }
 0x416   :  { %4302 = vmatprep.subr.bf16.mxu0 %v6297_v50  ;;  %v6373_v50 = vld [vmem:[#allocation7 + $0x3f8] ss:$24 sps:$4 sm:$0xff]  }
 0x419   :  { %4303 = vmatpush1.bf16.msra.mxu0 %v6295_v40  ;;  %v6378_v40 = vld [vmem:[#allocation7 + $0x42c] ss:$24 sps:$4 sm:$0xff]  }
 0x41a   :  { %4304 = vmatprep.subr.bf16.mxu0 %v6300_v52  ;;  %v6376_v52 = vld [vmem:[#allocation7 + $0x428] ss:$24 sps:$4 sm:$0xff]  }
 0x41d   :  { %4305 = vmatpush1.bf16.msra.mxu0 %v6298_v4  ;;  %v6381_v4 = vld [vmem:[#allocation7 + $0x45c] ss:$24 sps:$4 sm:$0xff]  }
 0x41e   :  { %4306 = vmatprep.subr.bf16.mxu0 %v6303_v54  ;;  %v6379_v54 = vld [vmem:[#allocation7 + $0x458] ss:$24 sps:$4 sm:$0xff]  }
 0x421   :  { %4307 = vmatpush1.bf16.msra.mxu0 %v6301_v56  ;;  %v6384_v56 = vld [vmem:[#allocation7 + $0x14] ss:$24 sps:$4 sm:$0xff]  }
 0x422   :  { %4308 = vmatprep.subr.bf16.mxu0 %v6306_v57  ;;  %v6382_v57 = vld [vmem:[#allocation7 + $0x10] ss:$24 sps:$4 sm:$0xff]  }
 0x425   :  { %4309 = vmatpush1.bf16.msra.mxu0 %v6304_v59  ;;  %v6387_v59 = vld [vmem:[#allocation7 + $0x44] ss:$24 sps:$4 sm:$0xff]  }
 0x426   :  { %4310 = vmatprep.subr.bf16.mxu0 %v6309_v61  ;;  %v6385_v61 = vld [vmem:[#allocation7 + $0x40] ss:$24 sps:$4 sm:$0xff]  }
 0x429   :  { %4311 = vmatpush1.bf16.msra.mxu0 %v6307_v62  ;;  %v6390_v62 = vld [vmem:[#allocation7 + $0x74] ss:$24 sps:$4 sm:$0xff]  }
 0x42a   :  { %4337 = vmatprep.subr.bf16.mxu0 %v6312_v63  ;;  %v6388_v63 = vld [vmem:[#allocation7 + $0x70] ss:$24 sps:$4 sm:$0xff]  }
 0x42c   :  { %4329 = vmatmul.mubr.bf16.vlgmr.msra.gmra.mrb[20].mxu0 %v6988_v2 }
 0x42d   :  { %4338 = vmatpush1.bf16.msra.mxu0 %v6310_v37  ;;  %4369 = vmatprep.mubr.bf16.mxu0 %v6981_v43  ;;  %v6393_v37 = vld [vmem:[#allocation7 + $0xa4] ss:$24 sps:$4 sm:$0xff]  }
 0x42e   :  { %4339 = vmatprep.subr.bf16.mxu0 %v6315_v3  ;;  %v6391_v3 = vld [vmem:[#allocation7 + $0xa0] ss:$24 sps:$4 sm:$0xff]  }
 0x431   :  { %4340 = vmatpush1.bf16.msra.mxu0 %v6313_v1  ;;  %v6396_v1 = vld [vmem:[#allocation7 + $0xd4] ss:$24 sps:$4 sm:$0xff]  }
 0x432   :  { %4341 = vmatprep.subr.bf16.mxu0 %v6318_v6  ;;  %v6394_v6 = vld [vmem:[#allocation7 + $0xd0] ss:$24 sps:$4 sm:$0xff]  }
 0x435   :  { %4342 = vmatpush1.bf16.msra.mxu0 %v6316_v7  ;;  %v6399_v7 = vld [vmem:[#allocation7 + $0x104] ss:$24 sps:$4 sm:$0xff]  }
 0x436   :  { %4343 = vmatprep.subr.bf16.mxu0 %v6321_v9  ;;  %v6397_v9 = vld [vmem:[#allocation7 + $0x100] ss:$24 sps:$4 sm:$0xff]  }
 0x439   :  { %4344 = vmatpush1.bf16.msra.mxu0 %v6319_v8  ;;  %v6402_v8 = vld [vmem:[#allocation7 + $0x134] ss:$24 sps:$4 sm:$0xff]  }
 0x43a   :  { %4345 = vmatprep.subr.bf16.mxu0 %v6324_v10  ;;  %v6405_v10 = vld [vmem:[#allocation7 + $0x164] ss:$24 sps:$4 sm:$0xff]  }
 0x43d   :  { %4346 = vmatpush1.bf16.msra.mxu0 %v6322_v11  ;;  %v6403_v11 = vld [vmem:[#allocation7 + $0x160] ss:$24 sps:$4 sm:$0xff]  }
 0x43e   :  { %4347 = vmatprep.subr.bf16.mxu0 %v6327_v58  ;;  %v6408_v58 = vld [vmem:[#allocation7 + $0x194] ss:$24 sps:$4 sm:$0xff]  }
 0x441   :  { %4348 = vmatpush1.bf16.msra.mxu0 %v6325_v12  ;;  %v6406_v12 = vld [vmem:[#allocation7 + $0x190] ss:$24 sps:$4 sm:$0xff]  }
 0x442   :  { %4349 = vmatprep.subr.bf16.mxu0 %v6330_v38  ;;  %v6411_v38 = vld [vmem:[#allocation7 + $0x1c4] ss:$24 sps:$4 sm:$0xff]  }
 0x445   :  { %4350 = vmatpush1.bf16.msra.mxu0 %v6328_v60  ;;  %v6409_v60 = vld [vmem:[#allocation7 + $0x1c0] ss:$24 sps:$4 sm:$0xff]  }
 0x446   :  { %4351 = vmatprep.subr.bf16.mxu0 %v6333_v13  ;;  %v6414_v13 = vld [vmem:[#allocation7 + $0x1f4] ss:$24 sps:$4 sm:$0xff]  }
 0x449   :  { %4352 = vmatpush1.bf16.msra.mxu0 %v6331_v14  ;;  %v6412_v14 = vld [vmem:[#allocation7 + $0x1f0] ss:$24 sps:$4 sm:$0xff]  }
 0x44a   :  { %4353 = vmatprep.subr.bf16.mxu0 %v6336_v15  ;;  %v6417_v15 = vld [vmem:[#allocation7 + $0x224] ss:$24 sps:$4 sm:$0xff]  }
 0x44d   :  { %4354 = vmatpush1.bf16.msra.mxu0 %v6334_v16  ;;  %v6415_v16 = vld [vmem:[#allocation7 + $0x220] ss:$24 sps:$4 sm:$0xff]  }
 0x44e   :  { %4355 = vmatprep.subr.bf16.mxu0 %v6339_v17  ;;  %v6420_v17 = vld [vmem:[#allocation7 + $0x254] ss:$24 sps:$4 sm:$0xff]  }
 0x451   :  { %4356 = vmatpush1.bf16.msra.mxu0 %v6337_v18  ;;  %v6418_v18 = vld [vmem:[#allocation7 + $0x250] ss:$24 sps:$4 sm:$0xff]  }
 0x452   :  { %4357 = vmatprep.subr.bf16.mxu0 %v6342_v36  ;;  %v6423_v36 = vld [vmem:[#allocation7 + $0x284] ss:$24 sps:$4 sm:$0xff]  }
 0x455   :  { %4358 = vmatpush1.bf16.msra.mxu0 %v6340_v21  ;;  %v6421_v21 = vld [vmem:[#allocation7 + $0x280] ss:$24 sps:$4 sm:$0xff]  }
 0x456   :  { %4359 = vmatprep.subr.bf16.mxu0 %v6345_v22  ;;  %v6426_v22 = vld [vmem:[#allocation7 + $0x2b4] ss:$24 sps:$4 sm:$0xff]  }
 0x459   :  { %4360 = vmatpush1.bf16.msra.mxu0 %v6343_v23  ;;  %v6424_v23 = vld [vmem:[#allocation7 + $0x2b0] ss:$24 sps:$4 sm:$0xff]  }
 0x45a   :  { %4361 = vmatprep.subr.bf16.mxu0 %v6348_v24  ;;  %v6429_v24 = vld [vmem:[#allocation7 + $0x2e4] ss:$24 sps:$4 sm:$0xff]  }
 0x45d   :  { %4362 = vmatpush1.bf16.msra.mxu0 %v6346_v25  ;;  %v6427_v25 = vld [vmem:[#allocation7 + $0x2e0] ss:$24 sps:$4 sm:$0xff]  }
 0x45e   :  { %4363 = vmatprep.subr.bf16.mxu0 %v6351_v26  ;;  %v6432_v26 = vld [vmem:[#allocation7 + $0x314] ss:$24 sps:$4 sm:$0xff]  }
 0x461   :  { %4364 = vmatpush1.bf16.msra.mxu0 %v6349_v27  ;;  %v6430_v27 = vld [vmem:[#allocation7 + $0x310] ss:$24 sps:$4 sm:$0xff]  }
 0x462   :  { %4365 = vmatprep.subr.bf16.mxu0 %v6354_v28  ;;  %v6435_v28 = vld [vmem:[#allocation7 + $0x344] ss:$24 sps:$4 sm:$0xff]  }
 0x465   :  { %4366 = vmatpush1.bf16.msra.mxu0 %v6352_v29  ;;  %v6433_v29 = vld [vmem:[#allocation7 + $0x340] ss:$24 sps:$4 sm:$0xff]  }
 0x466   :  { %4367 = vmatprep.subr.bf16.mxu0 %v6357_v30  ;;  %v6438_v30 = vld [vmem:[#allocation7 + $0x374] ss:$24 sps:$4 sm:$0xff]  }
 0x469   :  { %4368 = vmatpush1.bf16.msra.mxu0 %v6355_v31  ;;  %v6436_v31 = vld [vmem:[#allocation7 + $0x370] ss:$24 sps:$4 sm:$0xff]  }
 0x46a   :  { %4378 = vmatprep.subr.bf16.mxu0 %v6360_v32  ;;  %v6441_v32 = vld [vmem:[#allocation7 + $0x3a4] ss:$24 sps:$4 sm:$0xff]  }
 0x46c   :  { %4370 = vmatmul.mubr.bf16.vlgmr.msra.gmra.mrb[24].mxu0 %v6983_v46 }
 0x46d   :  { %4379 = vmatpush1.bf16.msra.mxu0 %v6358_v33  ;;  %4410 = vmatprep.mubr.bf16.mxu0 %v6709_v0  ;;  %v6439_v33 = vld [vmem:[#allocation7 + $0x3a0] ss:$24 sps:$4 sm:$0xff]  }
 0x46e   :  { %4380 = vmatprep.subr.bf16.mxu0 %v6363_v34  ;;  %v6444_v34 = vld [vmem:[#allocation7 + $0x3d4] ss:$24 sps:$4 sm:$0xff]  }
 0x471   :  { %4381 = vmatpush1.bf16.msra.mxu0 %v6361_v35  ;;  %v6442_v35 = vld [vmem:[#allocation7 + $0x3d0] ss:$24 sps:$4 sm:$0xff]  }
 0x472   :  { %4382 = vmatprep.subr.bf16.mxu0 %v6366_v39  ;;  %v6447_v39 = vld [vmem:[#allocation7 + $0x404] ss:$24 sps:$4 sm:$0xff]  }
 0x475   :  { %4383 = vmatpush1.bf16.msra.mxu0 %v6364_v42  ;;  %v6450_v42 = vld [vmem:[#allocation7 + $0x434] ss:$24 sps:$4 sm:$0xff]  }
 0x476   :  { %4384 = vmatprep.subr.bf16.mxu0 %v6369_v45  ;;  %v6453_v45 = vld [vmem:[#allocation7 + $0x464] ss:$24 sps:$4 sm:$0xff]  }
 0x479   :  { %4385 = vmatpush1.bf16.msra.mxu0 %v6367_v5  ;;  %v6451_v5 = vld [vmem:[#allocation7 + $0x460] ss:$24 sps:$4 sm:$0xff]  }
 0x47a   :  { %4386 = vmatprep.subr.bf16.mxu0 %v6372_v47  ;;  %v6454_v47 = vld [vmem:[#allocation10 + $0x40] sm:$0xff]  }
 0x47b   :  { %5492 = vmatprep.subr.bf16.mxu1 %v6454_v47  ;;  %v6480_v47 = vld [vmem:[#allocation13 + $0x10] sm:$0xff]  }
 0x47d   :  { %4387 = vmatpush1.bf16.msra.mxu0 %v6370_v48  ;;  %v6455_v48 = vld [vmem:[#allocation10] sm:$0xff]  }
 0x47e   :  { %4388 = vmatprep.subr.bf16.mxu0 %v6375_v49  ;;  %v6456_v49 = vld [vmem:[#allocation10 + $0x48] sm:$0xff]   ;;  %5493 = vmatpush3.bf16.msra.mxu1 %v6455_v48  ;;  %v6481_v48 = vld [vmem:[#allocation13 + $0x18] sm:$0xff]  }
 0x47f   :  { %5494 = vmatprep.subr.bf16.mxu1 %v6456_v49  ;;  %v6482_v49 = vld [vmem:[#allocation13 + $0x20] sm:$0xff]  }
 0x481   :  { %4389 = vmatpush1.bf16.msra.mxu0 %v6373_v50  ;;  %v6457_v50 = vld [vmem:[#allocation10 + $0x8] sm:$0xff]  }
 0x482   :  { %4390 = vmatprep.subr.bf16.mxu0 %v6378_v40  ;;  %v6458_v40 = vld [vmem:[#allocation10 + $0x50] sm:$0xff]   ;;  %5495 = vmatpush3.bf16.msra.mxu1 %v6457_v50 }
 0x483   :  { %5496 = vmatprep.subr.bf16.mxu1 %v6458_v40  ;;  %v6483_v50 = vld [vmem:[#allocation13 + $0x28] sm:$0xff]   ;;  %v6484_v40 = vld [vmem:[#allocation13 + $0x30] sm:$0xff]  }
 0x485   :  { %4391 = vmatpush1.bf16.msra.mxu0 %v6376_v52  ;;  %v6459_v52 = vld [vmem:[#allocation10 + $0x10] sm:$0xff]  }
 0x486   :  { %4392 = vmatprep.subr.bf16.mxu0 %v6381_v4  ;;  %v6460_v4 = vld [vmem:[#allocation10 + $0x58] sm:$0xff]   ;;  %5497 = vmatpush3.bf16.msra.mxu1 %v6459_v52 }
 0x487   :  { %5498 = vmatprep.subr.bf16.mxu1 %v6460_v4  ;;  %v6485_v52 = vld [vmem:[#allocation13 + $0x38] sm:$0xff]  }
 0x489   :  { %4393 = vmatpush1.bf16.msra.mxu0 %v6379_v54  ;;  %v6461_v54 = vld [vmem:[#allocation10 + $0x18] sm:$0xff]  }
 0x48a   :  { %4419 = vmatprep.subr.bf16.mxu0 %v6384_v56  ;;  %v6462_v56 = vld [vmem:[#allocation10 + $0x60] sm:$0xff]   ;;  %5499 = vmatpush3.bf16.msra.mxu1 %v6461_v54 }
 0x48b   :  { %5500 = vmatprep.subr.bf16.mxu1 %v6462_v56 }
 0x48c   :  { %4411 = vmatmul.mubr.bf16.vlgmr.msra.gmra.mrb[24].mxu0 %v6988_v2 }
 0x48d   :  { %4420 = vmatpush1.bf16.msra.mxu0 %v6382_v57  ;;  %4451 = vmatprep.mubr.bf16.mxu0 %v6981_v43  ;;  %v6400_v43 = vld [vmem:[#allocation7 + $0x130] ss:$24 sps:$4 sm:$0xff]  }
 0x48e   :  { %4421 = vmatprep.subr.bf16.mxu0 %v6387_v59  ;;  %v6463_v57 = vld [vmem:[#allocation10 + $0x20] sm:$0xff]   ;;  %v6464_v59 = vld [vmem:[#allocation10 + $0x68] sm:$0xff]  }
 0x48f   :  { %5501 = vmatpush3.bf16.msra.mxu1 %v6463_v57 }
 0x490   :  { %5502 = vmatprep.subr.bf16.mxu1 %v6464_v59 }
 0x491   :  { %4422 = vmatpush1.bf16.msra.mxu0 %v6385_v61  ;;  %v6465_v61 = vld [vmem:[#allocation10 + $0x28] sm:$0xff]  }
 0x492   :  { %4423 = vmatprep.subr.bf16.mxu0 %v6390_v62 }
 0x493   :  { %5503 = vmatpush3.bf16.msra.mxu1 %v6465_v61  ;;  %v5458_v61 = vld [vmem:[#allocation12] ss:$0 sm:$0xff] }
 0x495   :  { %4424 = vmatpush1.bf16.msra.mxu0 %v6388_v63 }
 0x496   :  { %4425 = vmatprep.subr.bf16.mxu0 %v6393_v37 }
 0x499   :  { %4426 = vmatpush1.bf16.msra.mxu0 %v6391_v3  ;;  %v6466_v3 = vld [vmem:[#allocation10 + $0x70] sm:$0xff]  }
 0x49a   :  { %4427 = vmatprep.subr.bf16.mxu0 %v6396_v1  ;;  %v6467_v1 = vld [vmem:[#allocation10 + $0x30] sm:$0xff]   ;;  %5504 = vmatprep.subr.bf16.mxu1 %v6466_v3 }
 0x49b   :  { %5505 = vmatpush3.bf16.msra.mxu1 %v6467_v1 }
 0x49d   :  { %4428 = vmatpush1.bf16.msra.mxu0 %v6394_v6  ;;  %v6468_v6 = vld [vmem:[#allocation10 + $0x78] sm:$0xff]  }
 0x49e   :  { %4429 = vmatprep.subr.bf16.mxu0 %v6399_v7  ;;  %v6469_v7 = vld [vmem:[#allocation10 + $0x38] sm:$0xff]   ;;  %5506 = vmatprep.subr.bf16.mxu1 %v6468_v6 }
 0x49f   :  { %5507 = vmatpush3.bf16.msra.mxu1 %v6469_v7 }
 0x4a1   :  { %4430 = vmatpush1.bf16.msra.mxu0 %v6397_v9  ;;  %v6710_v9 = vmov 0.0  }
 0x4a2   :  { %4431 = vmatprep.subr.bf16.mxu0 %v6402_v8  ;;  %5532 = vmatprep.subr.bf16.mxu1 %v6710_v9  ;;  %v3503_v8 = vld [vmem:[#allocation9] sm:$0x3f] }
 0x4a5   :  { %4432 = vmatpush1.bf16.msra.mxu0 %v6400_v43  ;;  %v3508_v43 = vrot.slane %v3503_v8, %v1147_v53  ;;  %v3524_v53 = vrot.slane %v3503_v8, %v1163_v20 }
 0x4a6   :  { %4433 = vmatprep.subr.bf16.mxu0 %v6405_v10  ;;  %v3520_v10 = vrot.slane %v3503_v8, %v1159_v55  ;;  %v3528_v55 = vrot.slane %v3503_v8, %v1167_v44  ;;  %v6472_v44 = vld [vmem:[#allocation10 + $0x90] sm:$0xff]  }
 0x4a9   :  { %4434 = vmatpush1.bf16.msra.mxu0 %v6403_v11 }
 0x4aa   :  { %4435 = vmatprep.subr.bf16.mxu0 %v6408_v58 }
 0x4ad   :  { %4436 = vmatpush1.bf16.msra.mxu0 %v6406_v12 }
 0x4ae   :  { %4437 = vmatprep.subr.bf16.mxu0 %v6411_v38 }
 0x4b1   :  { %4438 = vmatpush1.bf16.msra.mxu0 %v6409_v60 }
 0x4b2   :  { %4439 = vmatprep.subr.bf16.mxu0 %v6414_v13 }
 0x4b5   :  { %4440 = vmatpush1.bf16.msra.mxu0 %v6412_v14 }
 0x4b6   :  { %4441 = vmatprep.subr.bf16.mxu0 %v6417_v15 }
 0x4b9   :  { %4442 = vmatpush1.bf16.msra.mxu0 %v6415_v16 }
 0x4ba   :  { %4443 = vmatprep.subr.bf16.mxu0 %v6420_v17  ;;  %v3512_v17 = vrot.slane %v3503_v8, %v1151_v19 }
 0x4bd   :  { %4444 = vmatpush1.bf16.msra.mxu0 %v6418_v18  ;;  %v3516_v18 = vrot.slane %v3503_v8, %v1155_v41  ;;  %v5483_v8 = vld [vmem:[#allocation15] ss:$0 sm:$0xff] }
 0x4be   :  { %4445 = vmatprep.subr.bf16.mxu0 %v6423_v36 }
 0x4c1   :  { %4446 = vmatpush1.bf16.msra.mxu0 %v6421_v21 }
 0x4c2   :  { %4447 = vmatprep.subr.bf16.mxu0 %v6426_v22 }
 0x4c5   :  { %4448 = vmatpush1.bf16.msra.mxu0 %v6424_v23 }
 0x4c6   :  { %4449 = vmatprep.subr.bf16.mxu0 %v6429_v24 }
 0x4c9   :  { %4450 = vmatpush1.bf16.msra.mxu0 %v6427_v25 }
 0x4ca   :  { %4460 = vmatprep.subr.bf16.mxu0 %v6432_v26 }
 0x4cc   :  { %4452 = vmatmul.mubr.bf16.vlgmr.msra.gmra.mrb[28].mxu0 %v6983_v46  ;;  %v6445_v46 = vld [vmem:[#allocation7 + $0x400] ss:$24 sps:$4 sm:$0xff]  }
 0x4cd   :  { %4461 = vmatpush1.bf16.msra.mxu0 %v6430_v27  ;;  %4492 = vmatprep.mubr.bf16.mxu0 %v6709_v0  ;;  %v6448_v0 = vld [vmem:[#allocation7 + $0x430] ss:$24 sps:$4 sm:$0xff]  }
 0x4ce   :  { %4462 = vmatprep.subr.bf16.mxu0 %v6435_v28 }
 0x4d1   :  { %4463 = vmatpush1.bf16.msra.mxu0 %v6433_v29 }
 0x4d2   :  { %4464 = vmatprep.subr.bf16.mxu0 %v6438_v30 }
 0x4d5   :  { %4465 = vmatpush1.bf16.msra.mxu0 %v6436_v31 }
 0x4d6   :  { %4466 = vmatprep.subr.bf16.mxu0 %v6441_v32 }
 0x4d9   :  { %4467 = vmatpush1.bf16.msra.mxu0 %v6439_v33  ;;  %v6470_v33 = vld [vmem:[#allocation10 + $0x80] sm:$0xff]  }
 0x4da   :  { %4468 = vmatprep.subr.bf16.mxu0 %v6444_v34  ;;  %v6473_v34 = vld [vmem:[#allocation10 + $0x98] sm:$0xff]  }
 0x4dd   :  { %4469 = vmatpush1.bf16.msra.mxu0 %v6442_v35  ;;  %v6474_v35 = vld [vmem:[#allocation10 + $0xa0] sm:$0xff]  }
 0x4de   :  { %4470 = vmatprep.subr.bf16.mxu0 %v6447_v39  ;;  %v6475_v39 = vld [vmem:[#allocation10 + $0xa8] sm:$0xff]  }
 0x4e1   :  { %4471 = vmatpush1.bf16.msra.mxu0 %v6445_v46  ;;  %v6476_v46 = vld [vmem:[#allocation10 + $0xb0] sm:$0xff]  }
 0x4e2   :  { %4472 = vmatprep.subr.bf16.mxu0 %v6450_v42  ;;  %v6477_v42 = vld [vmem:[#allocation10 + $0xb8] sm:$0xff]  }
 0x4e5   :  { %4473 = vmatpush1.bf16.msra.mxu0 %v6448_v0 }
 0x4e6   :  { %4474 = vmatprep.subr.bf16.mxu0 %v6453_v45  ;;  %v6478_v45 = vld [vmem:[#allocation13] sm:$0xff]  }
 0x4e9   :  { %4475 = vmatpush1.bf16.msra.mxu0 %v6451_v5  ;;  %v6479_v5 = vld [vmem:[#allocation13 + $0x8] sm:$0xff]  }
 0x4ec   :  { %4493 = vmatmul.mubr.bf16.vlgmr.msra.gmra.mrb[28].mxu0 %v6988_v2 }
 0x4ff   :  { %v4330_v62 = vpop.f32.mrb[20].mxu0 }
 0x500   :  { %v4332_v63 = vpop.f32.mrb[21].mxu0  ;;  %v5578_v11 = vadd.f32 %v4330_v62, %v3508_v43 }
 0x501   :  { %v4334_v37 = vpop.f32.mrb[22].mxu0  ;;  %v5579_v36 = vadd.f32 %v4332_v63, %v3512_v17 }
 0x502   :  { %v4335_v2 = vpop.f32.mrb[23].mxu0  ;;  %v4501_v14 = vmax.f32 %v5578_v11, 0.0 }
 0x503   :  { %v4502_v27 = vmax.f32 %v5579_v36, 0.0 }
 0x55f   :  { %v4412_v58 = vpop.f32.mrb[24].mxu0 }
 0x560   :  { %v4414_v12 = vpop.f32.mrb[25].mxu0  ;;  %v5580_v21 = vadd.f32 %v4412_v58, %v3516_v18 }
 0x561   :  { %v5581_v38 = vadd.f32 %v4414_v12, %v3520_v10  ;;  %v4416_v60 = vpop.f32.mrb[26].mxu0 }
 0x562   :  { %v4417_v13 = vpop.f32.mrb[27].mxu0  ;;  %v4503_v19 = vmax.f32 %v5580_v21, 0.0 }
 0x563   :  { %v4504_v15 = vmax.f32 %v5581_v38, 0.0 }
 0x565   :  { %v4507_v16 = vmax.f32 %v4501_v14, %v4504_v15 }
 0x567   :  { %v4510_v20 = vpack.c.bf16 %v4507_v16, %v4507_v16 }
 0x5bf   :  { %v4494_v22 = vpop.f32.mrb[28].mxu0 }
 0x5c0   :  { %v5582_v23 = vadd.f32 %v4494_v22, %v3524_v53  ;;  %v4496_v24 = vpop.f32.mrb[29].mxu0 }
 0x5c1   :  { %v5583_v25 = vadd.f32 %v4496_v24, %v3528_v55  ;;  %v4498_v26 = vpop.f32.mrb[30].mxu0 }
 0x5c2   :  { %v4505_v28 = vmax.f32 %v5582_v23, 0.0  ;;  %v4499_v29 = vpop.f32.mrb[31].mxu0 }
 0x5c3   :  { %v4506_v30 = vmax.f32 %v5583_v25, 0.0 }
 0x5c4   :  { %v4508_v31 = vmax.f32 %v4502_v27, %v4505_v28 }
 0x5c5   :  { %v4509_v41 = vmax.f32 %v4503_v19, %v4506_v30 }
 0x5c6   :  { %v4511_v32 = vpack.c.bf16 %v4508_v31, %v4508_v31 }
 0x5c7   :  { %v4512_v0 = vpack.c.bf16 %v4509_v41, %v4509_v41 }
 0x5c8   :  { %4744 = vmatprep.mubr.bf16.mxu1 %v4511_v32 }
 0x5c9   :  { %4745 = vmatmul.mubr.bf16.vlgmr.msra.gmra.mrb[20].mxu1 %v4510_v20 }
 0x5ca   :  { %5533 = vmatpush3.bf16.msra.mxu1 %v6470_v33  ;;  %5548 = vmatprep.mubr.msk.bf16.mxu1 %vm6711_vm1, %v6710_v9 }
 0x5cb   :  { %5534 = vmatprep.subr.bf16.mxu1 %v6710_v9 }
 0x5ce   :  { %5535 = vmatpush3.bf16.msra.mxu1 %v6471_v51 }
 0x5cf   :  { %5536 = vmatprep.subr.bf16.mxu1 %v6710_v9 }
 0x5d2   :  { %5537 = vmatpush3.bf16.msra.mxu1 %v6472_v44 }
 0x5d3   :  { %5538 = vmatprep.subr.bf16.mxu1 %v6710_v9 }
 0x5d6   :  { %5539 = vmatpush3.bf16.msra.mxu1 %v6473_v34 }
 0x5d7   :  { %5540 = vmatprep.subr.bf16.mxu1 %v6710_v9 }
 0x5da   :  { %5541 = vmatpush3.bf16.msra.mxu1 %v6474_v35 }
 0x5db   :  { %5542 = vmatprep.subr.bf16.mxu1 %v6710_v9 }
 0x5de   :  { %5543 = vmatpush3.bf16.msra.mxu1 %v6475_v39 }
 0x5df   :  { %5544 = vmatprep.subr.bf16.mxu1 %v6710_v9 }
 0x5e2   :  { %5545 = vmatpush3.bf16.msra.mxu1 %v6476_v46 }
 0x5e3   :  { %5546 = vmatprep.subr.bf16.mxu1 %v6710_v9 }
 0x5e6   :  { %5547 = vmatpush3.bf16.msra.mxu1 %v6477_v42 }
 0x5e7   :  { %5552 = vmatprep.subr.bf16.mxu1 %v6710_v9 }
 0x5e9   :  { %5549 = vmatmul.mubr.bf16.vlgmr.msra.gmra.mrb[24].mxu1 %v4512_v0 }
 0x5ea   :  { %5568 = vmatprep.mubr.msk.bf16.mxu1 %vm6711_vm1, %v6710_v9  ;;  %5553 = vmatpush3.bf16.msra.mxu1 %v6478_v45 }
 0x5eb   :  { %5554 = vmatprep.subr.bf16.mxu1 %v6710_v9 }
 0x5ee   :  { %5555 = vmatpush3.bf16.msra.mxu1 %v6479_v5 }
 0x5ef   :  { %5556 = vmatprep.subr.bf16.mxu1 %v6710_v9 }
 0x5f2   :  { %5557 = vmatpush3.bf16.msra.mxu1 %v6480_v47 }
 0x5f3   :  { %5558 = vmatprep.subr.bf16.mxu1 %v6710_v9 }
 0x5f6   :  { %5559 = vmatpush3.bf16.msra.mxu1 %v6481_v48 }
 0x5f7   :  { %5560 = vmatprep.subr.bf16.mxu1 %v6710_v9 }
 0x5fa   :  { %5561 = vmatpush3.bf16.msra.mxu1 %v6482_v49 }
 0x5fb   :  { %5562 = vmatprep.subr.bf16.mxu1 %v6710_v9 }
 0x5fe   :  { %5563 = vmatpush3.bf16.msra.mxu1 %v6483_v50 }
 0x5ff   :  { %5564 = vmatprep.subr.bf16.mxu1 %v6710_v9 }
 0x602   :  { %5565 = vmatpush3.bf16.msra.mxu1 %v6484_v40 }
 0x603   :  { %5566 = vmatprep.subr.bf16.mxu1 %v6710_v9 }
 0x606   :  { %5567 = vmatpush3.bf16.msra.mxu1 %v6485_v52 }
 0x69c   :  { %v5508_v4 = vpop.f32.mrb[20].mxu1 }
 0x69d   :  { %v5509_v54 = vpop.f32.mrb[21].mxu1 }
 0x69e   :  { %v5510_v56 = vadd.f32 %v5509_v54, %v5508_v4  ;;  %v5511_v57 = vpop.f32.mrb[22].mxu1 }
 0x69f   :  { %v5512_v59 = vpop.f32.mrb[23].mxu1 }
 0x6a0   :  { %v4747_v62 = vadd.f32 %v5510_v56, %v5458_v61 }
 0x6bc   :  { %v4786_v63 = vpop.f32.mrb[24].mxu1 }
 0x6bd   :  { %v4787_v37 = vadd.f32 %v4786_v63, %v4747_v62  ;;  %v5550_v2 = vpop.f32.mrb[25].mxu1 }
 0x6be   :  { %v4789_v3 = vpop.f32.mrb[26].mxu1 }
 0x6bf   :  { %v4792_v1 = vmax.f32 %v4787_v37, 0.0  ;;  %v5551_v6 = vpop.f32.mrb[27].mxu1 }
 0x6c1   :  { %v4793_v7 = vpack.c.bf16 %v4792_v1, %v4792_v1 }
 0x6c3   :  { %5569 = vmatmul.mubr.bf16.vlgmr.msra.gmra.mrb[28].mxu1 %v4793_v7 }
 0x796   :  { %v4899_v43 = vpop.f32.mrb[28].mxu1 }
 0x797   :  { %v4900_v9 = vadd.f32 %v5483_v8, %v4899_v43  ;;  %v5570_v10 = vpop.f32.mrb[29].mxu1 }
 0x798   :  { %v4902_v11 = vpop.f32.mrb[30].mxu1 }
 0x799   :  { %4905 = vst [vmem:[%s7044_s10] sm:$0xff] %v4900_v9  ;;  %v5571_v58 = vpop.f32.mrb[31].mxu1 }
 0x79a   :  { %4910 = vsyncpa [#allocation3], 1 }
 0x79b   :  { %4911 = vsyncpa [#allocation5], 1 }
 0x79c   :  { %4912 = vsyncpa [#allocation8], 1 }
 0x79d   :  { %4913 = vsyncpa [#allocation11], 1 }
 0x79e   :  { %4914 = vsyncpa [#allocation14], 1 }

</bundles_post_ra>
